<compile_context>
chip_gen: v5e
topology: v5e:2x2
jax: 0.10.0
libtpu: 0.0.40
codegen_flags: <defaults>
</compile_context>

<pallas_src>
import math

import jax
import jax.numpy as jnp
from jax.experimental import pallas as pl
from jax.experimental.pallas import tpu as pltpu


# -----------------------------------------------------------------------------
# Pallas kernel: fused  one-hot lerp gather -> Linear(128->512) -> silu
#                       -> Linear(512->512) -> silu
# -----------------------------------------------------------------------------
def _diff_emb_kernel(lo_ref, hi_ref, frac_ref, emb_ref,
                     w1_ref, b1_ref, w2_hbm, b2_ref,
                     o_ref, w2_vmem, w2_sem):
    # Kick off the largest DMA (w2) immediately so it overlaps the gather,
    # the first matmul and the first SiLU.
    w2_cp = pltpu.make_async_copy(w2_hbm, w2_vmem, w2_sem)
    w2_cp.start()

    B = o_ref.shape[0]
    T_pad = emb_ref.shape[0]

    # Fused embedding gather / lerp as a one-hot matmul on the MXU:
    #   sel[b, t] = (1 - frac[b]) * (t == lo[b]) + frac[b] * (t == hi[b])
    #   x = sel @ emb                                       (B, 128) f32
    # Integer-step path arrives as lo == hi, frac == 0  ->  plain row lookup.
    iota = jax.lax.broadcasted_iota(jnp.int32, (B, T_pad), 1)
    lo = lo_ref[...]                                   # (B, 1) int32
    hi = hi_ref[...]                                   # (B, 1) int32
    frac = frac_ref[...]                               # (B, 1) f32
    sel = (jnp.where(iota == lo, 1.0 - frac, 0.0)
           + jnp.where(iota == hi, frac, 0.0))         # (B, T_pad) f32
    x = jnp.dot(sel, emb_ref[...], preferred_element_type=jnp.float32)

    # Linear(128 -> 512) + SiLU.  MXU in bf16 with f32 accumulation; the
    # bias add / SiLU stay in f32 (v5e has no bf16 VPU/EUP).
    h = jnp.dot(x.astype(jnp.bfloat16), w1_ref[...],
                preferred_element_type=jnp.float32)
    h = h + b1_ref[...]                                # (B, 512) f32
    h = h * jax.nn.sigmoid(h)

    # Linear(512 -> 512) + SiLU.  Wait for the overlapped w2 copy first.
    # TODO(synk): fp8 (e4m3) w2 with per-channel scales on v7x, accuracy-gated.
    w2_cp.wait()
    y = jnp.dot(h.astype(jnp.bfloat16), w2_vmem[...],
                preferred_element_type=jnp.float32)
    y = y + b2_ref[...]                                # (B, 512) f32
    y = y * jax.nn.sigmoid(y)

    # TODO(synk): emit bf16 output if the downstream consumer casts anyway.
    o_ref[...] = y.astype(o_ref.dtype)


def _fused_diffusion_embedding(lo, hi, frac, emb, w1_t, b1, w2_t, b2):
    B = lo.shape[0]
    T_pad = emb.shape[0]

    vmem = pl.BlockSpec(memory_space=pltpu.MemorySpace.VMEM)
    hbm = pl.BlockSpec(memory_space=pl.ANY)            # w2: manual overlapped DMA

    cost = pl.CostEstimate(
        flops=2 * B * (T_pad * 128 + 128 * 512 + 512 * 512),
        transcendentals=2 * B * 512,                       # two sigmoids
        bytes_accessed=(T_pad * 128 * 4                    # embedding table (f32)
                        + 128 * 512 * 2 + 512 * 512 * 2    # bf16 weights
                        + 2 * 512 * 4                      # f32 biases
                        + B * 512 * 4                      # output
                        + 3 * B * 4),                      # lo / hi / frac
    )

    return pl.pallas_call(
        _diff_emb_kernel,
        out_shape=jax.ShapeDtypeStruct((B, 512), jnp.float32),
        in_specs=[vmem, vmem, vmem, vmem, vmem, vmem, hbm, vmem],
        out_specs=vmem,
        scratch_shapes=[pltpu.VMEM((512, 512), jnp.bfloat16),   # w2 landing buffer
                        pltpu.SemaphoreType.DMA],
        cost_estimate=cost,
    )(lo, hi, frac, emb, w1_t, b1, w2_t, b2)


# -----------------------------------------------------------------------------
# Module-equivalent wrapper
# -----------------------------------------------------------------------------
def build_embedding(max_steps: int) -> jnp.ndarray:
    """table[t, :] = [sin(t * 10^(d*4/63)), cos(t * 10^(d*4/63))], d in [0,64)."""
    steps = jnp.arange(max_steps, dtype=jnp.float32)[:, None]         # (T, 1)
    dims = jnp.arange(64, dtype=jnp.float32)[None, :]                 # (1, 64)
    table = steps * 10.0 ** (dims * 4.0 / 63.0)                       # (T, 64)
    return jnp.concatenate([jnp.sin(table), jnp.cos(table)], axis=1)  # (T, 128)


def init_params(key):
    """Deterministic synthetic Linear(128,512) / Linear(512,512) params
    (PyTorch-default-style uniform(-1/sqrt(fan_in), 1/sqrt(fan_in)))."""
    k1, k2, k3, k4 = jax.random.split(key, 4)
    bound1 = 1.0 / math.sqrt(128.0)
    bound2 = 1.0 / math.sqrt(512.0)
    # stored in PyTorch convention (out, in)
    w1 = jax.random.uniform(k1, (512, 128), jnp.float32, -bound1, bound1)
    b1 = jax.random.uniform(k2, (512,), jnp.float32, -bound1, bound1)
    w2 = jax.random.uniform(k3, (512, 512), jnp.float32, -bound2, bound2)
    b2 = jax.random.uniform(k4, (512,), jnp.float32, -bound2, bound2)
    return w1, b1, w2, b2


def prepare_params(embedding, w1, b1, w2, b2):
    """One-time parameter preparation (hoisted out of the forward path):
    pre-transposed bf16 weights, (1,512) f32 biases, lane-padded f32 table."""
    T = embedding.shape[0]
    T_pad = max(128, ((T + 127) // 128) * 128)           # lane-friendly one-hot width
    emb_p = jnp.zeros((T_pad, 128), jnp.float32).at[:T, :].set(
        embedding.astype(jnp.float32))
    return {
        "n_steps": T,
        "emb": emb_p,
        "w1_t": w1.T.astype(jnp.bfloat16),
        "b1": b1.reshape(1, 512).astype(jnp.float32),
        "w2_t": w2.T.astype(jnp.bfloat16),
        "b2": b2.reshape(1, 512).astype(jnp.float32),
    }


def diffusion_embedding_forward(diffusion_step, params):
    """Equivalent of DiffusionEmbedding.forward.

    diffusion_step: (B,) int32/int64  -> table lookup
                    (B,) float        -> linear interpolation between rows
    returns: (B, 512) float32
    """
    B = diffusion_step.shape[0]
    T = params["n_steps"]
    if jnp.issubdtype(diffusion_step.dtype, jnp.integer):
        lo = jnp.clip(diffusion_step.astype(jnp.int32), 0, T - 1)
        hi = lo
        frac = jnp.zeros((B,), jnp.float32)
    else:
        t = diffusion_step.astype(jnp.float32)
        lo_f = jnp.floor(t)
        lo = jnp.clip(lo_f.astype(jnp.int32), 0, T - 1)
        hi = jnp.clip(jnp.ceil(t).astype(jnp.int32), 0, T - 1)
        frac = t - lo_f

    return _fused_diffusion_embedding(
        lo.reshape(B, 1), hi.reshape(B, 1), frac.reshape(B, 1),
        params["emb"], params["w1_t"], params["b1"],
        params["w2_t"], params["b2"])


# Pure-JAX f32 reference (sanity check of the kernel math)
def _reference_forward(diffusion_step, embedding, w1, b1, w2, b2):
    if jnp.issubdtype(diffusion_step.dtype, jnp.integer):
        x = embedding[diffusion_step]
    else:
        low_idx = jnp.floor(diffusion_step).astype(jnp.int32)
        high_idx = jnp.ceil(diffusion_step).astype(jnp.int32)
        low = embedding[low_idx]
        high = embedding[high_idx]
        x = low + (high - low) * (diffusion_step - low_idx)[:, None]
    h = x @ w1.T + b1
    h = h * jax.nn.sigmoid(h)
    y = h @ w2.T + b2
    return y * jax.nn.sigmoid(y)


if __name__ == "__main__":
    MAX_STEPS = 50
    BATCH = 8

    key = jax.random.PRNGKey(0)
    k_params, k_steps = jax.random.split(key)

    embedding = build_embedding(MAX_STEPS)          # (50, 128) float32 buffer
    w1, b1, w2, b2 = init_params(k_params)

    # One-time weight prep (pre-transposed bf16 weights, padded table).
    params = jax.tree_util.tree_map(
        jax.block_until_ready,
        prepare_params(embedding, w1, b1, w2, b2))

    # integer diffusion steps -> direct table lookup path
    diffusion_step = jax.random.randint(k_steps, (BATCH,), 0, MAX_STEPS, jnp.int32)

    out = diffusion_embedding_forward(diffusion_step, params)
    out = jax.block_until_ready(out)
    assert out.shape == (BATCH, 512) and out.dtype == jnp.float32

    # bf16-weight kernel vs f32 reference: allow bf16 quantization error.
    ref = _reference_forward(diffusion_step, embedding, w1, b1, w2, b2)
    assert jnp.allclose(out, ref, atol=5e-2, rtol=5e-2)

    # also exercise the float (lerp) path through the same kernel
    t_float = jnp.linspace(0.3, MAX_STEPS - 1.7, BATCH, dtype=jnp.float32)
    out_f = jax.block_until_ready(diffusion_embedding_forward(t_float, params))
    ref_f = _reference_forward(t_float, embedding, w1, b1, w2, b2)
    assert jnp.allclose(out_f, ref_f, atol=5e-2, rtol=5e-2)

    print("KERNEL_OK")
</pallas_src>

<mosaic_0001>
module attributes {stable_mosaic.version = 11 : i64} {
  func.func @_diff_emb_kernel(%arg0: memref<8x1xi32, #tpu.memory_space<vmem>>, %arg1: memref<8x1xi32, #tpu.memory_space<vmem>>, %arg2: memref<8x1xf32, #tpu.memory_space<vmem>>, %arg3: memref<128x128xf32, #tpu.memory_space<vmem>>, %arg4: memref<128x512xbf16, #tpu.memory_space<vmem>>, %arg5: memref<1x512xf32, #tpu.memory_space<vmem>>, %arg6: memref<512x512xbf16, #tpu.memory_space<any>>, %arg7: memref<1x512xf32, #tpu.memory_space<vmem>>, %arg8: memref<8x512xf32, #tpu.memory_space<vmem>>, %arg9: memref<512x512xbf16, #tpu.memory_space<vmem>>, %arg10: memref<!tpu.dma_semaphore, #tpu.memory_space<semaphore_mem>>) attributes {dimension_semantics = [], scalar_prefetch = 0 : i64, scratch_operands = 2 : i64, tpu.core_type = #tpu.core_type<tc>} {
    tpu.enqueue_dma source(%arg6 : memref<512x512xbf16, #tpu.memory_space<any>>) target(%arg9 : memref<512x512xbf16, #tpu.memory_space<vmem>>) target_semaphore(%arg10 : memref<!tpu.dma_semaphore, #tpu.memory_space<semaphore_mem>>)
    %0 = tpu.iota {dimensions = array<i32: 1>} : vector<8x128xi32>
    %c0 = arith.constant 0 : index
    %c0_0 = arith.constant 0 : index
    %1 = vector.load %arg0[%c0, %c0_0] : memref<8x1xi32, #tpu.memory_space<vmem>>, vector<8x1xi32>
    %c0_1 = arith.constant 0 : index
    %c0_2 = arith.constant 0 : index
    %2 = vector.load %arg1[%c0_1, %c0_2] : memref<8x1xi32, #tpu.memory_space<vmem>>, vector<8x1xi32>
    %c0_3 = arith.constant 0 : index
    %c0_4 = arith.constant 0 : index
    %3 = vector.load %arg2[%c0_3, %c0_4] : memref<8x1xf32, #tpu.memory_space<vmem>>, vector<8x1xf32>
    %4 = vector.broadcast %1 : vector<8x1xi32> to vector<8x128xi32>
    %5 = arith.cmpi eq, %0, %4 : vector<8x128xi32>
    %cst = arith.constant 1.000000e+00 : f32
    %6 = vector.broadcast %cst : f32 to vector<8x1xf32>
    %7 = arith.subf %6, %3 : vector<8x1xf32>
    %cst_5 = arith.constant 0.000000e+00 : f32
    %8 = vector.shape_cast %7 : vector<8x1xf32> to vector<8x1xf32>
    %9 = vector.broadcast %8 : vector<8x1xf32> to vector<8x128xf32>
    %10 = vector.broadcast %cst_5 : f32 to vector<8x128xf32>
    %11 = arith.select %5, %9, %10 : vector<8x128xi1>, vector<8x128xf32>
    %12 = vector.broadcast %2 : vector<8x1xi32> to vector<8x128xi32>
    %13 = arith.cmpi eq, %0, %12 : vector<8x128xi32>
    %cst_6 = arith.constant 0.000000e+00 : f32
    %14 = vector.shape_cast %3 : vector<8x1xf32> to vector<8x1xf32>
    %15 = vector.broadcast %14 : vector<8x1xf32> to vector<8x128xf32>
    %16 = vector.broadcast %cst_6 : f32 to vector<8x128xf32>
    %17 = arith.select %13, %15, %16 : vector<8x128xi1>, vector<8x128xf32>
    %18 = arith.addf %11, %17 : vector<8x128xf32>
    %c0_7 = arith.constant 0 : index
    %c0_8 = arith.constant 0 : index
    %19 = vector.load %arg3[%c0_7, %c0_8] : memref<128x128xf32, #tpu.memory_space<vmem>>, vector<128x128xf32>
    %cst_9 = arith.constant dense<0.000000e+00> : vector<8x128xf32>
    %20 = tpu.matmul %18, %19, %cst_9 {dimension_numbers = #tpu.dot_dimension_numbers<[1], [0], [0], [1], [0, 0, 1, 1], [], []>} : vector<8x128xf32>, vector<128x128xf32>, vector<8x128xf32> -> vector<8x128xf32>
    %21 = arith.truncf %20 : vector<8x128xf32> to vector<8x128xbf16>
    %c0_10 = arith.constant 0 : index
    %c0_11 = arith.constant 0 : index
    %22 = vector.load %arg4[%c0_10, %c0_11] : memref<128x512xbf16, #tpu.memory_space<vmem>>, vector<128x512xbf16>
    %cst_12 = arith.constant dense<0.000000e+00> : vector<8x512xf32>
    %23 = tpu.matmul %21, %22, %cst_12 {dimension_numbers = #tpu.dot_dimension_numbers<[1], [0], [0], [1], [0, 0, 1, 1], [], []>} : vector<8x128xbf16>, vector<128x512xbf16>, vector<8x512xf32> -> vector<8x512xf32>
    %c0_13 = arith.constant 0 : index
    %c0_14 = arith.constant 0 : index
    %24 = vector.load %arg5[%c0_13, %c0_14] : memref<1x512xf32, #tpu.memory_space<vmem>>, vector<1x512xf32>
    %25 = vector.broadcast %24 : vector<1x512xf32> to vector<8x512xf32>
    %26 = arith.addf %23, %25 : vector<8x512xf32>
    %27 = arith.negf %26 : vector<8x512xf32>
    %28 = math.exp %27 : vector<8x512xf32>
    %cst_15 = arith.constant 1.000000e+00 : f32
    %29 = vector.broadcast %cst_15 : f32 to vector<8x512xf32>
    %30 = arith.addf %29, %28 : vector<8x512xf32>
    %31 = arith.divf %29, %30 : vector<8x512xf32>
    %32 = arith.mulf %26, %31 : vector<8x512xf32>
    tpu.wait_dma2 semaphore(%arg10 : memref<!tpu.dma_semaphore, #tpu.memory_space<semaphore_mem>>) src(%arg6 : memref<512x512xbf16, #tpu.memory_space<any>>) dst(%arg9 : memref<512x512xbf16, #tpu.memory_space<vmem>>)
    %33 = arith.truncf %32 : vector<8x512xf32> to vector<8x512xbf16>
    %c0_16 = arith.constant 0 : index
    %c0_17 = arith.constant 0 : index
    %34 = vector.load %arg9[%c0_16, %c0_17] : memref<512x512xbf16, #tpu.memory_space<vmem>>, vector<512x512xbf16>
    %cst_18 = arith.constant dense<0.000000e+00> : vector<8x512xf32>
    %35 = tpu.matmul %33, %34, %cst_18 {dimension_numbers = #tpu.dot_dimension_numbers<[1], [0], [0], [1], [0, 0, 1, 1], [], []>} : vector<8x512xbf16>, vector<512x512xbf16>, vector<8x512xf32> -> vector<8x512xf32>
    %c0_19 = arith.constant 0 : index
    %c0_20 = arith.constant 0 : index
    %36 = vector.load %arg7[%c0_19, %c0_20] : memref<1x512xf32, #tpu.memory_space<vmem>>, vector<1x512xf32>
    %37 = vector.broadcast %36 : vector<1x512xf32> to vector<8x512xf32>
    %38 = arith.addf %35, %37 : vector<8x512xf32>
    %39 = arith.negf %38 : vector<8x512xf32>
    %40 = math.exp %39 : vector<8x512xf32>
    %cst_21 = arith.constant 1.000000e+00 : f32
    %41 = vector.broadcast %cst_21 : f32 to vector<8x512xf32>
    %42 = arith.addf %41, %40 : vector<8x512xf32>
    %43 = arith.divf %41, %42 : vector<8x512xf32>
    %44 = arith.mulf %38, %43 : vector<8x512xf32>
    %c0_22 = arith.constant 0 : index
    %c0_23 = arith.constant 0 : index
    %45 = vector.load %arg8[%c0_22, %c0_23] : memref<8x512xf32, #tpu.memory_space<vmem>>, vector<8x512xf32>
    tpu.vector_store %arg8[%c0_22, %c0_23], %44 {strides = array<i32>} : memref<8x512xf32, #tpu.memory_space<vmem>>, vector<8x512xf32>,
    return
  }
}

</mosaic_0001>

<bundles_post_ra>
// kernel: tpu_custom_call.1
= control target key start
LH: loop header
LB: loop body
LE: loop exit
PB: predicated region body
PF: predicated region fallthrough
CT: control target
= control target key end

     0   :  { %13 = vsyncpa [#allocation5], 0  ;;  %s2672_s0 = inlined_call_operand.vmem [shape: s32[8,1], index: 0, kind: input, shape index: {}]   ;;  %s2673_s1 = inlined_call_operand.vmem [shape: s32[8,1], index: 1, kind: input, shape index: {}]   ;;  %s2674_s2 = inlined_call_operand.vmem [shape: f32[8,1], index: 2, kind: input, shape index: {}]   ;;  %s2675_s3 = inlined_call_operand.hbm [shape: f32[128,128], index: 3, kind: input, shape index: {}]   ;;  %s2676_s4 = inlined_call_operand.hbm [shape: bf16[128,512], index: 4, kind: input, shape index: {}]   ;;  %s2677_s5 = inlined_call_operand.vmem [shape: f32[1,512], index: 5, kind: input, shape index: {}]   ;;  %s2678_s6 = inlined_call_operand.hbm [shape: bf16[512,512], index: 6, kind: input, shape index: {}]   ;;  %s2679_s7 = inlined_call_operand.vmem [shape: f32[1,512], index: 7, kind: input, shape index: {}]   ;;  %s2680_s8 = inlined_call_operand.hbm [shape: f32[8,512], index: 8, kind: output, shape index: {}]  }
   0x1   :  { %14 = vsyncpa [#allocation8], 0 }
   0x2   :  { %15 = vsyncpa [#allocation6], 0  ;;  %s26_s29 = sshll.u32 %s2675_s3, 4  ;;  %s2529_s30 = smov [#allocation4]   ;;  %s27_s29 = int_to_ptr.hbm [resolvable:$true] %s26_s29 }
   0x3   :  { %s28_s9 = sshll.u32 %s2529_s30, 4  ;;  %s39_s12 = sshll.u32 %s2676_s4, 4  ;;  %s29_s9 = int_to_ptr.vmem [resolvable:$true] %s28_s9  ;;  %s40_s12 = int_to_ptr.hbm [resolvable:$true] %s39_s12 }
   0x4   :  { %s2530_s13 = smov 128   ;;  %s2531_s14 = smov 8  }
   0x5   :  { %34 = dma.hbm_to_vmem [thread:$0]  %s27_s29, 2048, %s29_s9, [#allocation5], %s2530_s13, %s2530_s13, %s2531_s14  }
   0x6   :  { %s2532_s15 = smov [#allocation7]   ;;  %s2533_s17 = smov 256  }
   0x7   :  { %s41_s16 = sshll.u32 %s2532_s15, 4  ;;  %s2534_s18 = smov 16   ;;  %s42_s16 = int_to_ptr.vmem [resolvable:$true] %s41_s16 }
   0x8   :  { %47 = dma.hbm_to_vmem [thread:$0]  %s40_s12, 4096, %s42_s16, [#allocation8], %s2533_s17, %s2533_s17, %s2534_s18  }
   0x9   :  { %2521 = dma.done.wait [#allocation5], 2048  }
   0xa   :  { %2522 = vsyncadd [#allocation5], 4294965248 }
   0xb   :  { %2523 = dma.done.wait [#allocation8], 4096  }
   0xc   :  { %2524 = vsyncadd [#allocation8], 4294963200  ;;  %v2535_v0 = vmov 0   ;;  %v75_v1 = vld [vmem:[%s2672_s0] sm:$0xff]  ;;  %v115_v4 = vld [vmem:[#allocation4 + $0x78] sm:$0xff]  ;;  %s2536_s23 = smov [#allocation2]  }
   0xd   :  { %2391 = vset.pattern.permute.xlu0 %v2535_v0  ;;  %2392 = vset.pattern.permute.xlu1 %v2535_v0  ;;  %v77_v2 = vld [vmem:[%s2674_s2] sm:$0xff]  ;;  %v114_v5 = vld [vmem:[#allocation4 + $0x70] sm:$0xff]  ;;  %v113_v6 = vld [vmem:[#allocation4 + $0x68] sm:$0xff]  ;;  %s67_s2 = sshll.u32 %s2678_s6, 4  ;;  %s69_s24 = sshll.u32 %s2536_s23, 4  ;;  %s68_s2 = int_to_ptr.hbm [resolvable:$true] %s67_s2  ;;  %s70_s24 = int_to_ptr.vmem [resolvable:$true] %s69_s24 }
   0xe   :  { %79 = vperm.xlu0 %2391, %v75_v1   ;;  %v82_v3 = vsub.f32 1.0, %v77_v2  ;;  %116 = vmatpush.msra.mxu0 %v115_v4  ;;  %v112_v7 = vld [vmem:[#allocation4 + $0x60] sm:$0xff]  ;;  %v111_v9 = vld [vmem:[#allocation4 + $0x58] sm:$0xff]  ;;  %v110_v10 = vld [vmem:[#allocation4 + $0x50] sm:$0xff]  ;;  %72 = dma.hbm_to_vmem [thread:$0]  %s68_s2, 16384, %s70_s24, [#allocation3] }
   0xf   :  { %v76_v8 = vld [vmem:[%s2673_s1] sm:$0xff]  ;;  %v109_v11 = vld [vmem:[#allocation4 + $0x48] sm:$0xff]  ;;  %v107_v13 = vld [vmem:[#allocation4 + $0x38] sm:$0xff] }
  0x10   :  { %85 = vperm.xlu1 %2392, %v82_v3   ;;  %117 = vmatpush.msra.mxu0 %v114_v5  ;;  %v108_v12 = vld [vmem:[#allocation4 + $0x40] sm:$0xff]  ;;  %v106_v14 = vld [vmem:[#allocation4 + $0x30] sm:$0xff]  ;;  %v105_v15 = vld [vmem:[#allocation4 + $0x28] sm:$0xff] }
  0x11   :  { %v104_v16 = vld [vmem:[#allocation4 + $0x20] sm:$0xff]  ;;  %v103_v17 = vld [vmem:[#allocation4 + $0x18] sm:$0xff]  ;;  %v102_v18 = vld [vmem:[#allocation4 + $0x10] sm:$0xff] }
  0x12   :  { %118 = vmatpush.msra.mxu0 %v113_v6  ;;  %v101_v19 = vld [vmem:[#allocation4 + $0x8] sm:$0xff]  ;;  %v100_v20 = vld [vmem:[#allocation4] sm:$0xff]  ;;  %v2252_v22 = vld [vmem:[#allocation7 + $0xec] sm:$0xf0] }
  0x13   :  { %v1687_v21 = vld [vmem:[#allocation7 + $0xe0] sm:$0xf]  ;;  %v2250_v23 = vld [vmem:[#allocation7 + $0xe4] sm:$0xf]  ;;  %v1689_v25 = vld [vmem:[#allocation7 + $0xf0] sm:$0xf0] }
  0x14   :  { %119 = vmatpush.msra.mxu0 %v112_v7  ;;  %v1688_v24 = vor.u32 %v2252_v22, %v1687_v21  ;;  %v1695_v26 = vld [vmem:[#allocation7 + $0xe8] sm:$0xf]  ;;  %v2253_v27 = vld [vmem:[#allocation7 + $0xf4] sm:$0xf0]  ;;  %v1692_v28 = vor.u32 %v2250_v23, %v1689_v25  ;;  %v2251_v30 = vld [vmem:[#allocation7 + $0xec] sm:$0xf]  ;;  %v73_v23 = vlaneseq }
  0x15   :  { %v1696_v29 = vor.u32 %v2253_v27, %v1695_v26  ;;  %v1697_v31 = vld [vmem:[#allocation7 + $0xf8] sm:$0xf0]  ;;  %v1671_v32 = vld [vmem:[#allocation7 + $0xc0] sm:$0xf]  ;;  %v2248_v34 = vld [vmem:[#allocation7 + $0xcc] sm:$0xf0] }
  0x16   :  { %90 = vperm.xlu0 %2391, %v76_v8   ;;  %120 = vmatpush.msra.mxu0 %v111_v9  ;;  %v1700_v33 = vor.u32 %v2251_v30, %v1697_v31  ;;  %v2246_v35 = vld [vmem:[#allocation7 + $0xc4] sm:$0xf]  ;;  %v1673_v36 = vld [vmem:[#allocation7 + $0xd0] sm:$0xf0]  ;;  %v1672_v37 = vor.u32 %v2248_v34, %v1671_v32  ;;  %v1679_v39 = vld [vmem:[#allocation7 + $0xc8] sm:$0xf] }
  0x17   :  { %339 = vmatpush.bf16.msra.mxu1 %v1688_v24  ;;  %352 = vmatpush.bf16.msra.mxu2 %v1692_v28  ;;  %v1676_v38 = vor.u32 %v2246_v35, %v1673_v36  ;;  %v2249_v40 = vld [vmem:[#allocation7 + $0xd4] sm:$0xf0]  ;;  %v2247_v41 = vld [vmem:[#allocation7 + $0xcc] sm:$0xf]  ;;  %v1681_v43 = vld [vmem:[#allocation7 + $0xd8] sm:$0xf0] }
  0x18   :  { %95 = vperm.xlu1 %2392, %v77_v2   ;;  %121 = vmatpush.msra.mxu0 %v110_v10  ;;  %v1680_v42 = vor.u32 %v2249_v40, %v1679_v39  ;;  %v1655_v44 = vld [vmem:[#allocation7 + $0xa0] sm:$0xf]  ;;  %v2244_v45 = vld [vmem:[#allocation7 + $0xac] sm:$0xf0]  ;;  %v1684_v46 = vor.u32 %v2247_v41, %v1681_v43  ;;  %v2242_v47 = vld [vmem:[#allocation7 + $0xa4] sm:$0xf] }
  0x19   :  { %365 = vmatpush.bf16.msra.mxu3 %v1696_v29  ;;  %v1657_v48 = vld [vmem:[#allocation7 + $0xb0] sm:$0xf0]  ;;  %v1663_v49 = vld [vmem:[#allocation7 + $0xa8] sm:$0xf]  ;;  %v1656_v50 = vor.u32 %v2244_v45, %v1655_v44  ;;  %v2245_v51 = vld [vmem:[#allocation7 + $0xb4] sm:$0xf0] }
  0x1a   :  { %122 = vmatpush.msra.mxu0 %v109_v11  ;;  %v2243_v52 = vld [vmem:[#allocation7 + $0xac] sm:$0xf]  ;;  %v1665_v53 = vld [vmem:[#allocation7 + $0xb8] sm:$0xf0]  ;;  %v1660_v54 = vor.u32 %v2242_v47, %v1657_v48  ;;  %v1664_v55 = vor.u32 %v2245_v51, %v1663_v49  ;;  %v1639_v56 = vld [vmem:[#allocation7 + $0x80] sm:$0xf] }
  0x1b   :  { %340 = vmatpush.bf16.msra.mxu1 %v1672_v37  ;;  %353 = vmatpush.bf16.msra.mxu2 %v1676_v38  ;;  %v2240_v57 = vld [vmem:[#allocation7 + $0x8c] sm:$0xf0]  ;;  %v2238_v58 = vld [vmem:[#allocation7 + $0x84] sm:$0xf]  ;;  %v1668_v59 = vor.u32 %v2243_v52, %v1665_v53  ;;  %v1641_v60 = vld [vmem:[#allocation7 + $0x90] sm:$0xf0] }
  0x1c   :  { %123 = vmatpush.msra.mxu0 %v108_v12  ;;  %v1647_v61 = vld [vmem:[#allocation7 + $0x88] sm:$0xf]  ;;  %v2241_v62 = vld [vmem:[#allocation7 + $0x94] sm:$0xf0]  ;;  %v2239_v63 = vld [vmem:[#allocation7 + $0x8c] sm:$0xf]  ;;  %v1640_v1 = vor.u32 %v2240_v57, %v1639_v56  ;;  %v1644_v2 = vor.u32 %v2238_v58, %v1641_v60 }
  0x1d   :  { %366 = vmatpush.bf16.msra.mxu3 %v1680_v42  ;;  %v1649_v0 = vld [vmem:[#allocation7 + $0x98] sm:$0xf0]  ;;  %v1648_v3 = vor.u32 %v2241_v62, %v1647_v61  ;;  %v1623_v4 = vld [vmem:[#allocation7 + $0x60] sm:$0xf]  ;;  %v2236_v5 = vld [vmem:[#allocation7 + $0x6c] sm:$0xf0] }
  0x1e   :  { %124 = vmatpush.msra.mxu0 %v107_v13  ;;  %v2234_v6 = vld [vmem:[#allocation7 + $0x64] sm:$0xf]  ;;  %v1652_v7 = vor.u32 %v2239_v63, %v1649_v0  ;;  %v1625_v8 = vld [vmem:[#allocation7 + $0x70] sm:$0xf0]  ;;  %v1631_v9 = vld [vmem:[#allocation7 + $0x68] sm:$0xf]  ;;  %v1624_v13 = vor.u32 %v2236_v5, %v1623_v4 }
  0x1f   :  { %341 = vmatpush.bf16.msra.mxu1 %v1656_v50  ;;  %354 = vmatpush.bf16.msra.mxu2 %v1660_v54  ;;  %v2237_v10 = vld [vmem:[#allocation7 + $0x74] sm:$0xf0]  ;;  %v2235_v11 = vld [vmem:[#allocation7 + $0x6c] sm:$0xf]  ;;  %v1633_v12 = vld [vmem:[#allocation7 + $0x78] sm:$0xf0] }
  0x20   :  { %125 = vmatpush.msra.mxu0 %v106_v14  ;;  %v1628_v14 = vor.u32 %v2234_v6, %v1625_v8  ;;  %v1615_v21 = vld [vmem:[#allocation7 + $0x48] sm:$0xf]  ;;  %v2233_v22 = vld [vmem:[#allocation7 + $0x54] sm:$0xf0]  ;;  %v2231_v25 = vld [vmem:[#allocation7 + $0x4c] sm:$0xf] }
  0x21   :  { %367 = vmatpush.bf16.msra.mxu3 %v1664_v55  ;;  %v1617_v26 = vld [vmem:[#allocation7 + $0x58] sm:$0xf0]  ;;  %v1616_v30 = vor.u32 %v2233_v22, %v1615_v21  ;;  %v1591_v31 = vld [vmem:[#allocation7 + $0x20] sm:$0xf]  ;;  %v2228_v32 = vld [vmem:[#allocation7 + $0x2c] sm:$0xf0] }
  0x22   :  { %126 = vmatpush.msra.mxu0 %v105_v15  ;;  %v1632_v15 = vor.u32 %v2237_v10, %v1631_v9  ;;  %v1620_v34 = vor.u32 %v2231_v25, %v1617_v26  ;;  %v1593_v35 = vld [vmem:[#allocation7 + $0x30] sm:$0xf0]  ;;  %v1599_v36 = vld [vmem:[#allocation7 + $0x28] sm:$0xf]  ;;  %v2229_v37 = vld [vmem:[#allocation7 + $0x34] sm:$0xf0]  ;;  %v1592_v41 = vor.u32 %v2228_v32, %v1591_v31 }
  0x23   :  { %342 = vmatpush.bf16.msra.mxu1 %v1640_v1  ;;  %355 = vmatpush.bf16.msra.mxu2 %v1644_v2  ;;  %v74_v38 = vand.u32 127, %v73_v23  ;;  %v2227_v39 = vld [vmem:[#allocation7 + $0x2c] sm:$0xf]  ;;  %v1601_v40 = vld [vmem:[#allocation7 + $0x38] sm:$0xf0]  ;;  %v1600_v43 = vor.u32 %v2229_v37, %v1599_v36 }
  0x24   :  { %127 = vmatpush.msra.mxu0 %v104_v16  ;;  %v1607_v16 = vld [vmem:[#allocation7 + $0x40] sm:$0xf]  ;;  %v1604_v44 = vor.u32 %v2227_v39, %v1601_v40  ;;  %v2224_v51 = vld [vmem:[#allocation7 + $0xc] sm:$0xf0]  ;;  %v2222_v52 = vld [vmem:[#allocation7 + $0x4] sm:$0xf] }
  0x25   :  { %368 = vmatpush.bf16.msra.mxu3 %v1648_v3  ;;  %v1575_v50 = vld [vmem:[#allocation7] sm:$0xf]  ;;  %v1577_v54 = vld [vmem:[#allocation7 + $0x10] sm:$0xf0]  ;;  %v1583_v55 = vld [vmem:[#allocation7 + $0x8] sm:$0xf] }
  0x26   :  { %128 = vmatpush.msra.mxu0 %v103_v17  ;;  %v2232_v17 = vld [vmem:[#allocation7 + $0x4c] sm:$0xf0]  ;;  %v1576_v53 = vor.u32 %v2224_v51, %v1575_v50  ;;  %v2225_v56 = vld [vmem:[#allocation7 + $0x14] sm:$0xf0]  ;;  %v1580_v57 = vor.u32 %v2222_v52, %v1577_v54  ;;  %v1585_v60 = vld [vmem:[#allocation7 + $0x18] sm:$0xf0] }
  0x27   :  { %343 = vmatpush.bf16.msra.mxu1 %v1624_v13  ;;  %v1608_v27 = vor.u32 %v2232_v17, %v1607_v16  ;;  %356 = vmatpush.bf16.msra.mxu2 %v1628_v14  ;;  %v1584_v58 = vor.u32 %v2225_v56, %v1583_v55  ;;  %v169_v0 = vld [vmem:[%s2677_s5] sm:$0xf] }
  0x28   :  { %129 = vmatpush.msra.mxu0 %v102_v18  ;;  %v2230_v18 = vld [vmem:[#allocation7 + $0x44] sm:$0xf]  ;;  %v171_v1 = vperm.slane %v169_v0, 0  ;;  %v174_v2 = vperm.slane %v169_v0, 3  ;;  %v172_v8 = vperm.slane %v169_v0, 1  ;;  %v173_v10 = vperm.slane %v169_v0, 2 }
  0x29   :  { %369 = vmatpush.bf16.msra.mxu3 %v1632_v15 }
  0x2a   :  { %130 = vmatpush.msra.mxu0 %v101_v19  ;;  %v1636_v19 = vor.u32 %v2235_v11, %v1633_v12 }
  0x2b   :  { %344 = vmatpush.bf16.msra.mxu1 %v1608_v27 }
  0x2c   :  { %131 = vmatpush.msra.mxu0 %v100_v20  ;;  %v1609_v20 = vld [vmem:[#allocation7 + $0x50] sm:$0xf0] }
  0x2d   :  { %v1612_v29 = vor.u32 %v2230_v18, %v1609_v20  ;;  %370 = vmatpush.bf16.msra.mxu3 %v1616_v30 }
  0x2e   :  { %378 = vmatpush.bf16.msrb.mxu0 %v1700_v33  ;;  %v2226_v33 = vld [vmem:[#allocation7 + $0x24] sm:$0xf] }
  0x2f   :  { %357 = vmatpush.bf16.msra.mxu2 %v1612_v29  ;;  %v1596_v42 = vor.u32 %v2226_v33, %v1593_v35  ;;  %345 = vmatpush.bf16.msra.mxu1 %v1592_v41 }
  0x31   :  { %371 = vmatpush.bf16.msra.mxu3 %v1600_v43 }
  0x32   :  { %379 = vmatpush.bf16.msrb.mxu0 %v1684_v46 }
  0x33   :  { %358 = vmatpush.bf16.msra.mxu2 %v1596_v42  ;;  %346 = vmatpush.bf16.msra.mxu1 %v1576_v53 }
  0x35   :  { %372 = vmatpush.bf16.msra.mxu3 %v1584_v58 }
  0x36   :  { %380 = vmatpush.bf16.msrb.mxu0 %v1668_v59  ;;  %v2223_v59 = vld [vmem:[#allocation7 + $0xc] sm:$0xf] }
  0x37   :  { %v1588_v61 = vor.u32 %v2223_v59, %v1585_v60  ;;  %359 = vmatpush.bf16.msra.mxu2 %v1580_v57 }
  0x3a   :  { %381 = vmatpush.bf16.msrb.mxu0 %v1652_v7 }
  0x3e   :  { %382 = vmatpush.bf16.msrb.mxu0 %v1636_v19 }
  0x42   :  { %383 = vmatpush.bf16.msrb.mxu0 %v1620_v34 }
  0x46   :  { %384 = vmatpush.bf16.msrb.mxu0 %v1604_v44 }
  0x4a   :  { %385 = vmatpush.bf16.msrb.mxu0 %v1588_v61 }
  0x80   :  { %v80_v24 = vpop.permute.xlu0 %79 }
  0x81   :  { %vm81_vm0 = vcmp.eq.s32.totalorder %v74_v38, %v80_v24 }
  0x82   :  { %v86_v28 = vpop.permute.xlu1 %85 }
  0x83   :  { %v88_v47 = vsel %vm81_vm0, %v86_v28, 0.0 }
  0x88   :  { %v91_v45 = vpop.permute.xlu0 %90 }
  0x89   :  { %vm92_vm1 = vcmp.eq.s32.totalorder %v74_v38, %v91_v45 }
  0x8a   :  { %v96_v46 = vpop.permute.xlu1 %95 }
  0x8b   :  { %v98_v48 = vsel %vm92_vm1, %v96_v46, 0.0 }
  0x8c   :  { %v99_v49 = vadd.f32 %v98_v48, %v88_v47 }
  0x8e   :  { %132 = vmatmul.f32.vlgmr.msra.gmra.mxu0 %v99_v49 }
 0x10b   :  { %v133_v62 = vpop.f32.mrf.mxu0 }
 0x10c   :  { %v136_v63 = vpack.c.bf16 %v133_v62, %v133_v62 }
 0x10e   :  { %347 = vmatmul.bf16.vlgmr.msra.gmra.mxu1 %v136_v63  ;;  %360 = vmatmul.bf16.vlgmr.msra.gmra.mxu2 %v136_v63 }
 0x10f   :  { %373 = vmatmul.bf16.vlgmr.msra.gmra.mxu3 %v136_v63  ;;  %386 = vmatmul.bf16.vlgmr.msrb.gmra.mxu0 %v136_v63 }
 0x18b   :  { %v348_v3 = vpop.f32.mrf.mxu1 }
 0x18c   :  { %v2604_v4 = vadd.f32 %v348_v3, %v171_v1  ;;  %v387_v5 = vpop.f32.mrf.mxu0 }
 0x18d   :  { %v2606_v6 = vadd.f32 %v387_v5, %v174_v2 }
 0x18e   :  { %v1701_v7 = vmul.f32 -1.442695, %v2604_v4 }
 0x18f   :  { %v1704_v9 = vmul.f32 -1.442695, %v2606_v6 }
 0x190   :  { %2393 = vpow2.f32 %v1701_v7 }
 0x191   :  { %2395 = vpow2.f32 %v1704_v9  ;;  %v361_v11 = vpop.f32.mrf.mxu2 }
 0x192   :  { %v2610_v12 = vadd.f32 %v361_v11, %v172_v8  ;;  %v374_v13 = vpop.f32.mrf.mxu3 }
 0x193   :  { %v2612_v14 = vadd.f32 %v374_v13, %v173_v10  ;;  %v350_v15 = vpop.f32.mrf.mxu1 }
 0x194   :  { %v1702_v16 = vmul.f32 -1.442695, %v2610_v12  ;;  %v389_v17 = vpop.f32.mrf.mxu0 }
 0x195   :  { %v1703_v18 = vmul.f32 -1.442695, %v2612_v14 }
 0x196   :  { %v2394_v19 = vpop.eup %2393  ;;  %2397 = vpow2.f32 %v1702_v16 }
 0x197   :  { %v2396_v20 = vpop.eup %2395  ;;  %v403_v21 = vadd.f32 1.0, %v2394_v19  ;;  %2399 = vpow2.f32 %v1703_v18 }
 0x198   :  { %v406_v22 = vadd.f32 1.0, %v2396_v20 }
 0x199   :  { %2401 = vrcp.f32 %v403_v21  ;;  %v363_v23 = vpop.f32.mrf.mxu2  ;;  %v416_v34 = vand.u32 2147483647, %v403_v21  ;;  %v418_v35 = vand.u32 2147483648, %v403_v21  ;;  %vm412_vm3 = vweird.f32 %v403_v21 }
 0x19a   :  { %2403 = vrcp.f32 %v406_v22  ;;  %v376_v24 = vpop.f32.mrf.mxu3  ;;  %v461_v37 = vand.u32 2147483647, %v406_v22  ;;  %v463_v38 = vand.u32 2147483648, %v406_v22  ;;  %vm457_vm4 = vweird.f32 %v406_v22 }
 0x19b   :  { %vm417_vm6 = vcmp.eq.f32.partialorder %v416_v34, 8.507059e+37  ;;  %v419_v44 = vor.u32 1.1754944e-38, %v418_v35 }
 0x19c   :  { %v2398_v25 = vpop.eup %2397  ;;  %vm462_vm8 = vcmp.eq.f32.partialorder %v461_v37, 8.507059e+37  ;;  %v464_v47 = vor.u32 1.1754944e-38, %v463_v38 }
 0x19d   :  { %v2400_v26 = vpop.eup %2399  ;;  %v404_v27 = vadd.f32 1.0, %v2398_v25 }
 0x19e   :  { %v405_v28 = vadd.f32 1.0, %v2400_v26 }
 0x19f   :  { %v2402_v29 = vpop.eup %2401  ;;  %2405 = vrcp.f32 %v404_v27  ;;  %v431_v51 = vand.u32 2147483647, %v404_v27  ;;  %v433_v52 = vand.u32 2147483648, %v404_v27  ;;  %vm427_vm12 = vweird.f32 %v404_v27 }
 0x1a0   :  { %v2404_v30 = vpop.eup %2403  ;;  %v408_v31 = vmul.f32 %v2402_v29, %v403_v21  ;;  %2407 = vrcp.f32 %v405_v28  ;;  %vm413_vm2 = vweird.f32 %v2402_v29  ;;  %v448_v56 = vand.u32 2147483648, %v405_v28 }
 0x1a1   :  { %v453_v32 = vmul.f32 %v2404_v30, %v406_v22  ;;  %vm458_vm5 = vweird.f32 %v2404_v30  ;;  %vm414_vm7 = vmor %vm412_vm3, %vm413_vm2  ;;  %v446_v62 = vand.u32 2147483647, %v405_v28  ;;  %v434_v0 = vor.u32 1.1754944e-38, %v433_v52 }
 0x1a2   :  { %v409_v33 = vsub.f32 1.0, %v408_v31  ;;  %vm459_vm9 = vmor %vm457_vm4, %vm458_vm5  ;;  %vm442_vm14 = vweird.f32 %v405_v28  ;;  %vm432_vm15 = vcmp.eq.f32.partialorder %v431_v51, 8.507059e+37  ;;  %v449_v3 = vor.u32 1.1754944e-38, %v448_v56 }
 0x1a3   :  { %v454_v36 = vsub.f32 1.0, %v453_v32  ;;  %vm447_vm1 = vcmp.eq.f32.partialorder %v446_v62, 8.507059e+37 }
 0x1a4   :  { %v410_v39 = vmul.f32 %v2402_v29, %v409_v33 }
 0x1a5   :  { %v2406_v40 = vpop.eup %2405  ;;  %v455_v41 = vmul.f32 %v2404_v30, %v454_v36 }
 0x1a6   :  { %v2408_v42 = vpop.eup %2407  ;;  %v411_v43 = vadd.f32 %v2402_v29, %v410_v39  ;;  %v423_v45 = vmul.f32 %v2406_v40, %v404_v27  ;;  %vm428_vm10 = vweird.f32 %v2406_v40 }
 0x1a7   :  { %v456_v46 = vadd.f32 %v2404_v30, %v455_v41  ;;  %v438_v48 = vmul.f32 %v2408_v42, %v405_v28  ;;  %vm443_vm11 = vweird.f32 %v2408_v42  ;;  %vm429_vm13 = vmor %vm427_vm12, %vm428_vm10 }
 0x1a8   :  { %v415_v49 = vsel %vm414_vm7, %v2402_v29, %v411_v43  ;;  %v424_v50 = vsub.f32 1.0, %v423_v45  ;;  %vm444_vm0 = vmor %vm442_vm14, %vm443_vm11 }
 0x1a9   :  { %v420_v53 = vsel %vm417_vm6, %v419_v44, %v415_v49  ;;  %v460_v54 = vsel %vm459_vm9, %v2404_v30, %v456_v46  ;;  %v439_v55 = vsub.f32 1.0, %v438_v48 }
 0x1aa   :  { %v2617_v57 = vmul.f32 %v420_v53, %v2604_v4  ;;  %v465_v58 = vsel %vm462_vm8, %v464_v47, %v460_v54  ;;  %v425_v59 = vmul.f32 %v2406_v40, %v424_v50 }
 0x1ab   :  { %v2620_v60 = vmul.f32 %v465_v58, %v2606_v6  ;;  %v440_v61 = vmul.f32 %v2408_v42, %v439_v55 }
 0x1ac   :  { %v426_v63 = vadd.f32 %v2406_v40, %v425_v59 }
 0x1ad   :  { %v441_v1 = vadd.f32 %v2408_v42, %v440_v61 }
 0x1ae   :  { %v430_v2 = vsel %vm429_vm13, %v2406_v40, %v426_v63 }
 0x1af   :  { %v435_v4 = vsel %vm432_vm15, %v434_v0, %v430_v2  ;;  %v445_v5 = vsel %vm444_vm0, %v2408_v42, %v441_v1 }
 0x1b0   :  { %v2623_v7 = vmul.f32 %v435_v4, %v2610_v12  ;;  %v450_v6 = vsel %vm447_vm1, %v449_v3, %v445_v5 }
 0x1b1   :  { %v2626_v8 = vmul.f32 %v450_v6, %v2612_v14 }
 0x1b2   :  { %2525 = dma.done.wait [#allocation3], 16384 }
 0x1b3   :  { %2526 = vsyncadd [#allocation3], 4294950912  ;;  %v1819_v9 = vld [vmem:[#allocation2 + $0xe0] sm:$0xf]  ;;  %v2284_v10 = vld [vmem:[#allocation2 + $0xec] sm:$0xf0] }
 0x1b4   :  { %v1947_v11 = vld [vmem:[#allocation2 + $0x1e0] sm:$0xf]  ;;  %v1820_v13 = vor.u32 %v2284_v10, %v1819_v9  ;;  %v2316_v15 = vld [vmem:[#allocation2 + $0x1ec] sm:$0xf0]  ;;  %s1556_s30 = sshll.u32 %s2680_s8, 4  ;;  %s1557_s30 = int_to_ptr.hbm [resolvable:$true] %s1556_s30 }
 0x1b5   :  { %v2075_v16 = vld [vmem:[#allocation2 + $0x2e0] sm:$0xf]  ;;  %v2348_v17 = vld [vmem:[#allocation2 + $0x2ec] sm:$0xf0]  ;;  %v1948_v18 = vor.u32 %v2316_v15, %v1947_v11 }
 0x1b6   :  { %v2076_v19 = vor.u32 %v2348_v17, %v2075_v16  ;;  %v2203_v20 = vld [vmem:[#allocation2 + $0x3e0] sm:$0xf]  ;;  %v2380_v21 = vld [vmem:[#allocation2 + $0x3ec] sm:$0xf0]  ;;  %1257 = vmatpush.bf16.msrb.mxu1 %v1820_v13 }
 0x1b7   :  { %v1803_v22 = vld [vmem:[#allocation2 + $0xc0] sm:$0xf]  ;;  %v2204_v12 = vor.u32 %v2380_v21, %v2203_v20  ;;  %v2280_v23 = vld [vmem:[#allocation2 + $0xcc] sm:$0xf0]  ;;  %1270 = vmatpush.bf16.msrb.mxu2 %v1948_v18 }
 0x1b8   :  { %v1931_v24 = vld [vmem:[#allocation2 + $0x1c0] sm:$0xf]  ;;  %v2312_v14 = vld [vmem:[#allocation2 + $0x1cc] sm:$0xf0]  ;;  %1283 = vmatpush.bf16.msrb.mxu3 %v2076_v19  ;;  %v1804_v25 = vor.u32 %v2280_v23, %v1803_v22 }
 0x1b9   :  { %v1932_v26 = vor.u32 %v2312_v14, %v1931_v24  ;;  %v2059_v27 = vld [vmem:[#allocation2 + $0x2c0] sm:$0xf]  ;;  %v2344_v28 = vld [vmem:[#allocation2 + $0x2cc] sm:$0xf0]  ;;  %1296 = vmatpush.bf16.msra.mxu0 %v2204_v12 }
 0x1ba   :  { %v2187_v29 = vld [vmem:[#allocation2 + $0x3c0] sm:$0xf]  ;;  %v2060_v30 = vor.u32 %v2344_v28, %v2059_v27  ;;  %v2376_v31 = vld [vmem:[#allocation2 + $0x3cc] sm:$0xf0]  ;;  %1258 = vmatpush.bf16.msrb.mxu1 %v1804_v25 }
 0x1bb   :  { %v1787_v32 = vld [vmem:[#allocation2 + $0xa0] sm:$0xf]  ;;  %v2276_v33 = vld [vmem:[#allocation2 + $0xac] sm:$0xf0]  ;;  %v2188_v34 = vor.u32 %v2376_v31, %v2187_v29  ;;  %1271 = vmatpush.bf16.msrb.mxu2 %v1932_v26 }
 0x1bc   :  { %v1915_v35 = vld [vmem:[#allocation2 + $0x1a0] sm:$0xf]  ;;  %v2308_v36 = vld [vmem:[#allocation2 + $0x1ac] sm:$0xf0]  ;;  %v1788_v38 = vor.u32 %v2276_v33, %v1787_v32  ;;  %1284 = vmatpush.bf16.msrb.mxu3 %v2060_v30 }
 0x1bd   :  { %v2043_v37 = vld [vmem:[#allocation2 + $0x2a0] sm:$0xf]  ;;  %v2340_v39 = vld [vmem:[#allocation2 + $0x2ac] sm:$0xf0]  ;;  %v1916_v42 = vor.u32 %v2308_v36, %v1915_v35  ;;  %1297 = vmatpush.bf16.msra.mxu0 %v2188_v34 }
 0x1be   :  { %v2171_v40 = vld [vmem:[#allocation2 + $0x3a0] sm:$0xf]  ;;  %v2372_v41 = vld [vmem:[#allocation2 + $0x3ac] sm:$0xf0]  ;;  %v2044_v43 = vor.u32 %v2340_v39, %v2043_v37  ;;  %1259 = vmatpush.bf16.msrb.mxu1 %v1788_v38  ;;  %v2282_v39 = vld [vmem:[#allocation2 + $0xe4] sm:$0xf] }
 0x1bf   :  { %v1771_v44 = vld [vmem:[#allocation2 + $0x80] sm:$0xf]  ;;  %v2272_v45 = vld [vmem:[#allocation2 + $0x8c] sm:$0xf0]  ;;  %v2172_v47 = vor.u32 %v2372_v41, %v2171_v40  ;;  %1272 = vmatpush.bf16.msrb.mxu2 %v1916_v42  ;;  %v1821_v40 = vld [vmem:[#allocation2 + $0xf0] sm:$0xf0] }
 0x1c0   :  { %v1899_v46 = vld [vmem:[#allocation2 + $0x180] sm:$0xf]  ;;  %v2304_v48 = vld [vmem:[#allocation2 + $0x18c] sm:$0xf0]  ;;  %v1772_v53 = vor.u32 %v2272_v45, %v1771_v44  ;;  %1285 = vmatpush.bf16.msrb.mxu3 %v2044_v43  ;;  %v2314_v41 = vld [vmem:[#allocation2 + $0x1e4] sm:$0xf] }
 0x1c1   :  { %v2027_v49 = vld [vmem:[#allocation2 + $0x280] sm:$0xf]  ;;  %v2336_v50 = vld [vmem:[#allocation2 + $0x28c] sm:$0xf0]  ;;  %v1900_v54 = vor.u32 %v2304_v48, %v1899_v46  ;;  %1298 = vmatpush.bf16.msra.mxu0 %v2172_v47  ;;  %v1949_v42 = vld [vmem:[#allocation2 + $0x1f0] sm:$0xf0] }
 0x1c2   :  { %v2155_v51 = vld [vmem:[#allocation2 + $0x380] sm:$0xf]  ;;  %v2368_v52 = vld [vmem:[#allocation2 + $0x38c] sm:$0xf0]  ;;  %v2028_v55 = vor.u32 %v2336_v50, %v2027_v49  ;;  %1260 = vmatpush.bf16.msrb.mxu1 %v1772_v53  ;;  %v2346_v43 = vld [vmem:[#allocation2 + $0x2e4] sm:$0xf]  ;;  %v1952_v53 = vor.u32 %v2314_v41, %v1949_v42 }
 0x1c3   :  { %v1755_v56 = vld [vmem:[#allocation2 + $0x60] sm:$0xf]  ;;  %v2268_v58 = vld [vmem:[#allocation2 + $0x6c] sm:$0xf0]  ;;  %v2156_v61 = vor.u32 %v2368_v52, %v2155_v51  ;;  %1273 = vmatpush.bf16.msrb.mxu2 %v1900_v54  ;;  %v2077_v45 = vld [vmem:[#allocation2 + $0x2f0] sm:$0xf0]  ;;  %v1824_v52 = vor.u32 %v2282_v39, %v1821_v40 }
 0x1c4   :  { %v1883_v59 = vld [vmem:[#allocation2 + $0x160] sm:$0xf]  ;;  %v2300_v62 = vld [vmem:[#allocation2 + $0x16c] sm:$0xf0]  ;;  %v1756_v3 = vor.u32 %v2268_v58, %v1755_v56  ;;  %1286 = vmatpush.bf16.msrb.mxu3 %v2028_v55  ;;  %v2378_v50 = vld [vmem:[#allocation2 + $0x3e4] sm:$0xf]  ;;  %v2080_v55 = vor.u32 %v2346_v43, %v2077_v45 }
 0x1c5   :  { %v2011_v63 = vld [vmem:[#allocation2 + $0x260] sm:$0xf]  ;;  %v2332_v0 = vld [vmem:[#allocation2 + $0x26c] sm:$0xf0]  ;;  %v1884_v4 = vor.u32 %v2300_v62, %v1883_v59  ;;  %1299 = vmatpush.bf16.msra.mxu0 %v2156_v61  ;;  %v2205_v51 = vld [vmem:[#allocation2 + $0x3f0] sm:$0xf0]  ;;  %v2630_v62 = vpack.c.bf16 %v2623_v7, %v2623_v7 }
 0x1c6   :  { %v2139_v1 = vld [vmem:[#allocation2 + $0x360] sm:$0xf]  ;;  %v2364_v2 = vld [vmem:[#allocation2 + $0x36c] sm:$0xf0]  ;;  %v2012_v5 = vor.u32 %v2332_v0, %v2011_v63  ;;  %1261 = vmatpush.bf16.msrb.mxu1 %v1756_v3  ;;  %v2278_v54 = vld [vmem:[#allocation2 + $0xc4] sm:$0xf]  ;;  %v2208_v63 = vor.u32 %v2378_v50, %v2205_v51  ;;  %v2638_v3 = vpack.c.bf16 %v2617_v57, %v2617_v57 }
 0x1c7   :  { %v1739_v6 = vld [vmem:[#allocation2 + $0x40] sm:$0xf]  ;;  %v2264_v9 = vld [vmem:[#allocation2 + $0x4c] sm:$0xf0]  ;;  %v2140_v11 = vor.u32 %v2364_v2, %v2139_v1  ;;  %1274 = vmatpush.bf16.msrb.mxu2 %v1884_v4  ;;  %v1805_v58 = vld [vmem:[#allocation2 + $0xd0] sm:$0xf0]  ;;  %v2634_v2 = vpack.c.bf16 %v2626_v8, %v2626_v8  ;;  %v2642_v8 = vpack.c.bf16 %v2620_v60, %v2620_v60 }
 0x1c8   :  { %v1867_v10 = vld [vmem:[#allocation2 + $0x140] sm:$0xf]  ;;  %v2296_v13 = vld [vmem:[#allocation2 + $0x14c] sm:$0xf0]  ;;  %v1740_v19 = vor.u32 %v2264_v9, %v1739_v6  ;;  %1287 = vmatpush.bf16.msrb.mxu3 %v2012_v5  ;;  %v2310_v59 = vld [vmem:[#allocation2 + $0x1c4] sm:$0xf]  ;;  %v1808_v6 = vor.u32 %v2278_v54, %v1805_v58 }
 0x1c9   :  { %v1995_v15 = vld [vmem:[#allocation2 + $0x240] sm:$0xf]  ;;  %v2328_v16 = vld [vmem:[#allocation2 + $0x24c] sm:$0xf0]  ;;  %v1868_v20 = vor.u32 %v2296_v13, %v1867_v10  ;;  %1300 = vmatpush.bf16.msra.mxu0 %v2140_v11  ;;  %v1933_v61 = vld [vmem:[#allocation2 + $0x1d0] sm:$0xf0] }
 0x1ca   :  { %v2123_v17 = vld [vmem:[#allocation2 + $0x340] sm:$0xf]  ;;  %v2360_v18 = vld [vmem:[#allocation2 + $0x34c] sm:$0xf0]  ;;  %v1996_v21 = vor.u32 %v2328_v16, %v1995_v15  ;;  %1262 = vmatpush.bf16.msrb.mxu1 %v1740_v19  ;;  %v2342_v0 = vld [vmem:[#allocation2 + $0x2c4] sm:$0xf]  ;;  %v1936_v7 = vor.u32 %v2310_v59, %v1933_v61 }
 0x1cb   :  { %v1723_v22 = vld [vmem:[#allocation2 + $0x20] sm:$0xf]  ;;  %v2260_v12 = vld [vmem:[#allocation2 + $0x2c] sm:$0xf0]  ;;  %v2124_v24 = vor.u32 %v2360_v18, %v2123_v17  ;;  %1275 = vmatpush.bf16.msrb.mxu2 %v1868_v20  ;;  %v2061_v1 = vld [vmem:[#allocation2 + $0x2d0] sm:$0xf0] }
 0x1cc   :  { %v1851_v23 = vld [vmem:[#allocation2 + $0x120] sm:$0xf]  ;;  %v2292_v14 = vld [vmem:[#allocation2 + $0x12c] sm:$0xf0]  ;;  %v1724_v29 = vor.u32 %v2260_v12, %v1723_v22  ;;  %1288 = vmatpush.bf16.msrb.mxu3 %v1996_v21  ;;  %v2374_v4 = vld [vmem:[#allocation2 + $0x3c4] sm:$0xf]  ;;  %v2064_v10 = vor.u32 %v2342_v0, %v2061_v1 }
 0x1cd   :  { %v1979_v25 = vld [vmem:[#allocation2 + $0x220] sm:$0xf]  ;;  %v2324_v26 = vld [vmem:[#allocation2 + $0x22c] sm:$0xf0]  ;;  %v1852_v32 = vor.u32 %v2292_v14, %v1851_v23  ;;  %1301 = vmatpush.bf16.msra.mxu0 %v2124_v24  ;;  %v2189_v5 = vld [vmem:[#allocation2 + $0x3d0] sm:$0xf0] }
 0x1ce   :  { %v2107_v27 = vld [vmem:[#allocation2 + $0x320] sm:$0xf]  ;;  %v2356_v28 = vld [vmem:[#allocation2 + $0x32c] sm:$0xf0]  ;;  %v1980_v33 = vor.u32 %v2324_v26, %v1979_v25  ;;  %1263 = vmatpush.bf16.msrb.mxu1 %v1724_v29  ;;  %v2274_v9 = vld [vmem:[#allocation2 + $0xa4] sm:$0xf]  ;;  %v2192_v57 = vor.u32 %v2374_v4, %v2189_v5 }
 0x1cf   :  { %v1707_v30 = vld [vmem:[#allocation2] sm:$0xf]  ;;  %v2256_v31 = vld [vmem:[#allocation2 + $0xc] sm:$0xf0]  ;;  %v2108_v37 = vor.u32 %v2356_v28, %v2107_v27  ;;  %1276 = vmatpush.bf16.msrb.mxu2 %v1852_v32  ;;  %v1789_v11 = vld [vmem:[#allocation2 + $0xb0] sm:$0xf0] }
 0x1d0   :  { %v1835_v34 = vld [vmem:[#allocation2 + $0x100] sm:$0xf]  ;;  %v2288_v35 = vld [vmem:[#allocation2 + $0x10c] sm:$0xf0]  ;;  %v1708_v44 = vor.u32 %v2256_v31, %v1707_v30  ;;  %1289 = vmatpush.bf16.msrb.mxu3 %v1980_v33  ;;  %v2306_v13 = vld [vmem:[#allocation2 + $0x1a4] sm:$0xf]  ;;  %v1792_v20 = vor.u32 %v2274_v9, %v1789_v11 }
 0x1d1   :  { %v1963_v36 = vld [vmem:[#allocation2 + $0x200] sm:$0xf]  ;;  %v2320_v38 = vld [vmem:[#allocation2 + $0x20c] sm:$0xf0]  ;;  %v1836_v48 = vor.u32 %v2288_v35, %v1835_v34  ;;  %1302 = vmatpush.bf16.msra.mxu0 %v2108_v37  ;;  %v1917_v15 = vld [vmem:[#allocation2 + $0x1b0] sm:$0xf0] }
 0x1d2   :  { %v2091_v46 = vld [vmem:[#allocation2 + $0x300] sm:$0xf]  ;;  %v2352_v47 = vld [vmem:[#allocation2 + $0x30c] sm:$0xf0]  ;;  %v1964_v49 = vor.u32 %v2320_v38, %v1963_v36  ;;  %1264 = vmatpush.bf16.msrb.mxu1 %v1708_v44  ;;  %v2338_v16 = vld [vmem:[#allocation2 + $0x2a4] sm:$0xf]  ;;  %v1920_v21 = vor.u32 %v2306_v13, %v1917_v15 }
 0x1d3   :  { %v2092_v56 = vor.u32 %v2352_v47, %v2091_v46  ;;  %1277 = vmatpush.bf16.msrb.mxu2 %v1836_v48  ;;  %v2045_v17 = vld [vmem:[#allocation2 + $0x2b0] sm:$0xf0]  ;;  %v2370_v18 = vld [vmem:[#allocation2 + $0x3a4] sm:$0xf] }
 0x1d4   :  { %1290 = vmatpush.bf16.msrb.mxu3 %v1964_v49  ;;  %v2173_v19 = vld [vmem:[#allocation2 + $0x3b0] sm:$0xf0]  ;;  %v2270_v22 = vld [vmem:[#allocation2 + $0x84] sm:$0xf]  ;;  %v2048_v60 = vor.u32 %v2338_v16, %v2045_v17 }
 0x1d5   :  { %1303 = vmatpush.bf16.msra.mxu0 %v2092_v56  ;;  %1265 = vmatmul.bf16.vlgmr.msrb.gmra.mxu1 %v2638_v3  ;;  %v1773_v12 = vld [vmem:[#allocation2 + $0x90] sm:$0xf0]  ;;  %v2302_v23 = vld [vmem:[#allocation2 + $0x184] sm:$0xf]  ;;  %v2176_v14 = vor.u32 %v2370_v18, %v2173_v19  ;;  %v1827_v18 = vld [vmem:[#allocation2 + $0xe8] sm:$0xf] }
 0x1d6   :  { %1309 = vmatpush.bf16.msra.mxu1 %v1824_v52  ;;  %1278 = vmatmul.bf16.vlgmr.msrb.gmra.mxu2 %v2630_v62  ;;  %v1901_v24 = vld [vmem:[#allocation2 + $0x190] sm:$0xf0]  ;;  %v2334_v25 = vld [vmem:[#allocation2 + $0x284] sm:$0xf]  ;;  %v1776_v29 = vor.u32 %v2270_v22, %v1773_v12  ;;  %v2285_v19 = vld [vmem:[#allocation2 + $0xf4] sm:$0xf0] }
 0x1d7   :  { %1322 = vmatpush.bf16.msra.mxu2 %v1952_v53  ;;  %1291 = vmatmul.bf16.vlgmr.msrb.gmra.mxu3 %v2634_v2  ;;  %v2029_v26 = vld [vmem:[#allocation2 + $0x290] sm:$0xf0]  ;;  %v2366_v27 = vld [vmem:[#allocation2 + $0x384] sm:$0xf]  ;;  %v1904_v30 = vor.u32 %v2302_v23, %v1901_v24  ;;  %v2083_v22 = vld [vmem:[#allocation2 + $0x2e8] sm:$0xf] }
 0x1d8   :  { %1335 = vmatpush.bf16.msra.mxu3 %v2080_v55  ;;  %1304 = vmatmul.bf16.vlgmr.msra.gmra.mxu0 %v2642_v8  ;;  %v2157_v28 = vld [vmem:[#allocation2 + $0x390] sm:$0xf0]  ;;  %v2266_v31 = vld [vmem:[#allocation2 + $0x64] sm:$0xf]  ;;  %v2032_v32 = vor.u32 %v2334_v25, %v2029_v26  ;;  %v1828_v26 = vor.u32 %v2285_v19, %v1827_v18  ;;  %v2147_v19 = vld [vmem:[#allocation2 + $0x368] sm:$0xf] }
 0x1d9   :  { %1348 = vmatpush.bf16.msrb.mxu0 %v2208_v63  ;;  %v1757_v33 = vld [vmem:[#allocation2 + $0x70] sm:$0xf0]  ;;  %v2298_v34 = vld [vmem:[#allocation2 + $0x164] sm:$0xf]  ;;  %v2160_v36 = vor.u32 %v2366_v27, %v2157_v28  ;;  %v2211_v27 = vld [vmem:[#allocation2 + $0x3e8] sm:$0xf] }
 0x1da   :  { %1310 = vmatpush.bf16.msra.mxu1 %v1808_v6  ;;  %v1885_v35 = vld [vmem:[#allocation2 + $0x170] sm:$0xf0]  ;;  %v2330_v37 = vld [vmem:[#allocation2 + $0x264] sm:$0xf]  ;;  %v1760_v41 = vor.u32 %v2266_v31, %v1757_v33  ;;  %v2381_v28 = vld [vmem:[#allocation2 + $0x3f4] sm:$0xf0] }
 0x1db   :  { %1323 = vmatpush.bf16.msra.mxu2 %v1936_v7  ;;  %v2013_v38 = vld [vmem:[#allocation2 + $0x270] sm:$0xf0]  ;;  %v2362_v39 = vld [vmem:[#allocation2 + $0x364] sm:$0xf]  ;;  %v1888_v42 = vor.u32 %v2298_v34, %v1885_v35  ;;  %v1811_v31 = vld [vmem:[#allocation2 + $0xc8] sm:$0xf] }
 0x1dc   :  { %1336 = vmatpush.bf16.msra.mxu3 %v2064_v10  ;;  %v2141_v40 = vld [vmem:[#allocation2 + $0x370] sm:$0xf0]  ;;  %v2262_v43 = vld [vmem:[#allocation2 + $0x44] sm:$0xf]  ;;  %v2016_v44 = vor.u32 %v2330_v37, %v2013_v38  ;;  %v1939_v33 = vld [vmem:[#allocation2 + $0x1c8] sm:$0xf]  ;;  %v2212_v38 = vor.u32 %v2381_v28, %v2211_v27 }
 0x1dd   :  { %1349 = vmatpush.bf16.msrb.mxu0 %v2192_v57  ;;  %v1741_v45 = vld [vmem:[#allocation2 + $0x50] sm:$0xf0]  ;;  %v2294_v46 = vld [vmem:[#allocation2 + $0x144] sm:$0xf]  ;;  %v2144_v48 = vor.u32 %v2362_v39, %v2141_v40  ;;  %v2313_v35 = vld [vmem:[#allocation2 + $0x1d4] sm:$0xf0] }
 0x1de   :  { %1311 = vmatpush.bf16.msra.mxu1 %v1792_v20  ;;  %v1869_v47 = vld [vmem:[#allocation2 + $0x150] sm:$0xf0]  ;;  %v2326_v49 = vld [vmem:[#allocation2 + $0x244] sm:$0xf]  ;;  %v1744_v53 = vor.u32 %v2262_v43, %v1741_v45  ;;  %v1955_v20 = vld [vmem:[#allocation2 + $0x1e8] sm:$0xf] }
 0x1df   :  { %1324 = vmatpush.bf16.msra.mxu2 %v1920_v21  ;;  %v1997_v50 = vld [vmem:[#allocation2 + $0x250] sm:$0xf0]  ;;  %v2358_v51 = vld [vmem:[#allocation2 + $0x344] sm:$0xf]  ;;  %v1872_v54 = vor.u32 %v2294_v46, %v1869_v47  ;;  %v2317_v21 = vld [vmem:[#allocation2 + $0x1f4] sm:$0xf0] }
 0x1e0   :  { %1337 = vmatpush.bf16.msra.mxu3 %v2048_v60  ;;  %v2125_v52 = vld [vmem:[#allocation2 + $0x350] sm:$0xf0]  ;;  %v2258_v55 = vld [vmem:[#allocation2 + $0x24] sm:$0xf]  ;;  %v2000_v56 = vor.u32 %v2326_v49, %v1997_v50  ;;  %v2349_v60 = vld [vmem:[#allocation2 + $0x2f4] sm:$0xf0] }
 0x1e1   :  { %1350 = vmatpush.bf16.msrb.mxu0 %v2176_v14  ;;  %v1725_v58 = vld [vmem:[#allocation2 + $0x30] sm:$0xf0]  ;;  %v2290_v59 = vld [vmem:[#allocation2 + $0x124] sm:$0xf]  ;;  %v2128_v63 = vor.u32 %v2358_v51, %v2125_v52  ;;  %v2345_v37 = vld [vmem:[#allocation2 + $0x2d4] sm:$0xf0] }
 0x1e2   :  { %1312 = vmatpush.bf16.msra.mxu1 %v1776_v29  ;;  %v1853_v61 = vld [vmem:[#allocation2 + $0x130] sm:$0xf0]  ;;  %v2322_v0 = vld [vmem:[#allocation2 + $0x224] sm:$0xf]  ;;  %v1728_v6 = vor.u32 %v2258_v55, %v1725_v58  ;;  %v1956_v29 = vor.u32 %v2317_v21, %v1955_v20  ;;  %v2195_v40 = vld [vmem:[#allocation2 + $0x3c8] sm:$0xf] }
 0x1e3   :  { %1325 = vmatpush.bf16.msra.mxu2 %v1904_v30  ;;  %v1981_v1 = vld [vmem:[#allocation2 + $0x230] sm:$0xf0]  ;;  %v2354_v4 = vld [vmem:[#allocation2 + $0x324] sm:$0xf]  ;;  %v1856_v7 = vor.u32 %v2290_v59, %v1853_v61  ;;  %v2084_v30 = vor.u32 %v2349_v60, %v2083_v22  ;;  %v2277_v45 = vld [vmem:[#allocation2 + $0xb4] sm:$0xf0] }
 0x1e4   :  { %1338 = vmatpush.bf16.msra.mxu3 %v2032_v32  ;;  %v2109_v5 = vld [vmem:[#allocation2 + $0x330] sm:$0xf0]  ;;  %v2254_v9 = vld [vmem:[#allocation2 + $0x4] sm:$0xf]  ;;  %v1984_v13 = vor.u32 %v2322_v0, %v1981_v1  ;;  %v2281_v32 = vld [vmem:[#allocation2 + $0xd4] sm:$0xf0] }
 0x1e5   :  { %1351 = vmatpush.bf16.msrb.mxu0 %v2160_v36  ;;  %v1709_v10 = vld [vmem:[#allocation2 + $0x10] sm:$0xf0]  ;;  %v2286_v11 = vld [vmem:[#allocation2 + $0x104] sm:$0xf]  ;;  %v2112_v17 = vor.u32 %v2354_v4, %v2109_v5  ;;  %v2067_v36 = vld [vmem:[#allocation2 + $0x2c8] sm:$0xf]  ;;  %v1812_v39 = vor.u32 %v2281_v32, %v1811_v31 }
 0x1e6   :  { %1313 = vmatpush.bf16.msra.mxu1 %v1760_v41  ;;  %v1837_v15 = vld [vmem:[#allocation2 + $0x110] sm:$0xf0]  ;;  %v2318_v57 = vld [vmem:[#allocation2 + $0x204] sm:$0xf]  ;;  %v1712_v12 = vor.u32 %v2254_v9, %v1709_v10  ;;  %v2377_v41 = vld [vmem:[#allocation2 + $0x3d4] sm:$0xf0]  ;;  %v2068_v43 = vor.u32 %v2345_v37, %v2067_v36 }
 0x1e7   :  { %1326 = vmatpush.bf16.msra.mxu2 %v1888_v42  ;;  %v1965_v16 = vld [vmem:[#allocation2 + $0x210] sm:$0xf0]  ;;  %v1840_v23 = vor.u32 %v2286_v11, %v1837_v15  ;;  %v2350_v24 = vld [vmem:[#allocation2 + $0x304] sm:$0xf]  ;;  %v1940_v42 = vor.u32 %v2313_v35, %v1939_v33  ;;  %v1923_v46 = vld [vmem:[#allocation2 + $0x1a8] sm:$0xf]  ;;  %v2196_v50 = vor.u32 %v2377_v41, %v2195_v40 }
 0x1e8   :  { %1339 = vmatpush.bf16.msra.mxu3 %v2016_v44  ;;  %v2093_v14 = vld [vmem:[#allocation2 + $0x310] sm:$0xf0]  ;;  %v1968_v25 = vor.u32 %v2318_v57, %v1965_v16  ;;  %v1795_v44 = vld [vmem:[#allocation2 + $0xa8] sm:$0xf]  ;;  %v2309_v47 = vld [vmem:[#allocation2 + $0x1b4] sm:$0xf0] }
 0x1e9   :  { %1352 = vmatpush.bf16.msrb.mxu0 %v2144_v48  ;;  %v2096_v34 = vor.u32 %v2350_v24, %v2093_v14  ;;  %v2051_v48 = vld [vmem:[#allocation2 + $0x2a8] sm:$0xf]  ;;  %v2341_v49 = vld [vmem:[#allocation2 + $0x2b4] sm:$0xf0]  ;;  %v1796_v51 = vor.u32 %v2277_v45, %v1795_v44 }
 0x1ea   :  { %1314 = vmatpush.bf16.msra.mxu1 %v1744_v53  ;;  %v2179_v52 = vld [vmem:[#allocation2 + $0x3a8] sm:$0xf]  ;;  %v2373_v53 = vld [vmem:[#allocation2 + $0x3b4] sm:$0xf0]  ;;  %v2052_v55 = vor.u32 %v2341_v49, %v2051_v48 }
 0x1eb   :  { %1327 = vmatpush.bf16.msra.mxu2 %v1872_v54  ;;  %v1924_v54 = vor.u32 %v2309_v47, %v1923_v46  ;;  %v2273_v58 = vld [vmem:[#allocation2 + $0x94] sm:$0xf0]  ;;  %v1907_v59 = vld [vmem:[#allocation2 + $0x188] sm:$0xf]  ;;  %v2180_v1 = vor.u32 %v2373_v53, %v2179_v52  ;;  %v2315_v53 = vld [vmem:[#allocation2 + $0x1ec] sm:$0xf] }
 0x1ec   :  { %1340 = vmatpush.bf16.msra.mxu3 %v2000_v56  ;;  %v1779_v56 = vld [vmem:[#allocation2 + $0x88] sm:$0xf]  ;;  %v2305_v61 = vld [vmem:[#allocation2 + $0x194] sm:$0xf0] }
 0x1ed   :  { %1353 = vmatpush.bf16.msrb.mxu0 %v2128_v63  ;;  %v2035_v63 = vld [vmem:[#allocation2 + $0x288] sm:$0xf]  ;;  %v2337_v0 = vld [vmem:[#allocation2 + $0x294] sm:$0xf0]  ;;  %v1780_v4 = vor.u32 %v2273_v58, %v1779_v56  ;;  %v2085_v58 = vld [vmem:[#allocation2 + $0x2f8] sm:$0xf0] }
 0x1ee   :  { %1315 = vmatpush.bf16.msra.mxu1 %v1728_v6  ;;  %v2163_v5 = vld [vmem:[#allocation2 + $0x388] sm:$0xf]  ;;  %v2369_v6 = vld [vmem:[#allocation2 + $0x394] sm:$0xf0]  ;;  %v2036_v9 = vor.u32 %v2337_v0, %v2035_v63 }
 0x1ef   :  { %1328 = vmatpush.bf16.msra.mxu2 %v1856_v7  ;;  %v1908_v7 = vor.u32 %v2305_v61, %v1907_v59  ;;  %v1763_v10 = vld [vmem:[#allocation2 + $0x68] sm:$0xf]  ;;  %v2269_v11 = vld [vmem:[#allocation2 + $0x74] sm:$0xf0] }
 0x1f0   :  { %1341 = vmatpush.bf16.msra.mxu3 %v1984_v13  ;;  %v1891_v13 = vld [vmem:[#allocation2 + $0x168] sm:$0xf]  ;;  %v2301_v15 = vld [vmem:[#allocation2 + $0x174] sm:$0xf0]  ;;  %v1764_v18 = vor.u32 %v2269_v11, %v1763_v10  ;;  %v1813_v11 = vld [vmem:[#allocation2 + $0xd8] sm:$0xf0] }
 0x1f1   :  { %1354 = vmatpush.bf16.msrb.mxu0 %v2112_v17  ;;  %v2019_v57 = vld [vmem:[#allocation2 + $0x268] sm:$0xf]  ;;  %v2333_v16 = vld [vmem:[#allocation2 + $0x274] sm:$0xf0]  ;;  %v2164_v17 = vor.u32 %v2369_v6, %v2163_v5  ;;  %v1892_v21 = vor.u32 %v2301_v15, %v1891_v13  ;;  %v2311_v13 = vld [vmem:[#allocation2 + $0x1cc] sm:$0xf] }
 0x1f2   :  { %1316 = vmatpush.bf16.msra.mxu1 %v1712_v12  ;;  %v2365_v20 = vld [vmem:[#allocation2 + $0x374] sm:$0xf0]  ;;  %v2020_v22 = vor.u32 %v2333_v16, %v2019_v57  ;;  %v1747_v60 = vld [vmem:[#allocation2 + $0x48] sm:$0xf]  ;;  %v1941_v15 = vld [vmem:[#allocation2 + $0x1d8] sm:$0xf0] }
 0x1f3   :  { %1329 = vmatpush.bf16.msra.mxu2 %v1840_v23  ;;  %v2265_v12 = vld [vmem:[#allocation2 + $0x54] sm:$0xf0]  ;;  %v1875_v23 = vld [vmem:[#allocation2 + $0x148] sm:$0xf]  ;;  %v2343_v16 = vld [vmem:[#allocation2 + $0x2cc] sm:$0xf] }
 0x1f4   :  { %1342 = vmatpush.bf16.msra.mxu3 %v1968_v25  ;;  %v2297_v24 = vld [vmem:[#allocation2 + $0x154] sm:$0xf0]  ;;  %v2003_v14 = vld [vmem:[#allocation2 + $0x248] sm:$0xf]  ;;  %v1748_v27 = vor.u32 %v2265_v12, %v1747_v60  ;;  %v1797_v12 = vld [vmem:[#allocation2 + $0xb8] sm:$0xf0] }
 0x1f5   :  { %1355 = vmatpush.bf16.msrb.mxu0 %v2096_v34  ;;  %1317 = vmatmul.bf16.vlgmr.msra.gmra.mxu1 %v2638_v3  ;;  %v2329_v25 = vld [vmem:[#allocation2 + $0x254] sm:$0xf0]  ;;  %v2131_v28 = vld [vmem:[#allocation2 + $0x348] sm:$0xf] }
 0x1f6   :  { %1361 = vmatpush.bf16.msrb.mxu1 %v1828_v26  ;;  %1330 = vmatmul.bf16.vlgmr.msra.gmra.mxu2 %v2630_v62  ;;  %v2148_v26 = vor.u32 %v2365_v20, %v2147_v19  ;;  %v2004_v31 = vor.u32 %v2329_v25, %v2003_v14  ;;  %v1731_v32 = vld [vmem:[#allocation2 + $0x28] sm:$0xf]  ;;  %v2261_v33 = vld [vmem:[#allocation2 + $0x34] sm:$0xf0]  ;;  %v2197_v19 = vld [vmem:[#allocation2 + $0x3d8] sm:$0xf0] }
 0x1f7   :  { %1374 = vmatpush.bf16.msrb.mxu2 %v1956_v29  ;;  %1343 = vmatmul.bf16.vlgmr.msra.gmra.mxu3 %v2634_v2  ;;  %v2361_v29 = vld [vmem:[#allocation2 + $0x354] sm:$0xf0]  ;;  %v1859_v34 = vld [vmem:[#allocation2 + $0x128] sm:$0xf]  ;;  %v1732_v40 = vor.u32 %v2261_v33, %v1731_v32  ;;  %v2339_v25 = vld [vmem:[#allocation2 + $0x2ac] sm:$0xf] }
 0x1f8   :  { %1387 = vmatpush.bf16.msrb.mxu3 %v2084_v30  ;;  %1356 = vmatmul.bf16.vlgmr.msrb.gmra.mxu0 %v2642_v8  ;;  %v1876_v30 = vor.u32 %v2297_v24, %v1875_v23  ;;  %v2293_v35 = vld [vmem:[#allocation2 + $0x134] sm:$0xf0]  ;;  %v1987_v36 = vld [vmem:[#allocation2 + $0x228] sm:$0xf]  ;;  %v2307_v23 = vld [vmem:[#allocation2 + $0x1ac] sm:$0xf] }
 0x1f9   :  { %1400 = vmatpush.bf16.msra.mxu0 %v2212_v38  ;;  %v2325_v37 = vld [vmem:[#allocation2 + $0x234] sm:$0xf0]  ;;  %v2132_v38 = vor.u32 %v2361_v29, %v2131_v28  ;;  %v1860_v44 = vor.u32 %v2293_v35, %v1859_v34  ;;  %v1843_v46 = vld [vmem:[#allocation2 + $0x108] sm:$0xf]  ;;  %v1925_v24 = vld [vmem:[#allocation2 + $0x1b8] sm:$0xf0] }
 0x1fa   :  { %1362 = vmatpush.bf16.msrb.mxu1 %v1812_v39  ;;  %v2115_v39 = vld [vmem:[#allocation2 + $0x328] sm:$0xf]  ;;  %v2357_v41 = vld [vmem:[#allocation2 + $0x334] sm:$0xf0]  ;;  %v1988_v45 = vor.u32 %v2325_v37, %v1987_v36  ;;  %v2181_v28 = vld [vmem:[#allocation2 + $0x3b8] sm:$0xf0] }
 0x1fb   :  { %1375 = vmatpush.bf16.msrb.mxu2 %v1940_v42  ;;  %v1715_v42 = vld [vmem:[#allocation2 + $0x8] sm:$0xf]  ;;  %v2289_v47 = vld [vmem:[#allocation2 + $0x114] sm:$0xf0]  ;;  %v2116_v52 = vor.u32 %v2357_v41, %v2115_v39  ;;  %v1781_v33 = vld [vmem:[#allocation2 + $0x98] sm:$0xf0] }
 0x1fc   :  { %1388 = vmatpush.bf16.msrb.mxu3 %v2068_v43  ;;  %v2257_v43 = vld [vmem:[#allocation2 + $0x14] sm:$0xf0]  ;;  %v1971_v48 = vld [vmem:[#allocation2 + $0x208] sm:$0xf]  ;;  %v1844_v63 = vor.u32 %v2289_v47, %v1843_v46  ;;  %v2303_v34 = vld [vmem:[#allocation2 + $0x18c] sm:$0xf] }
 0x1fd   :  { %1401 = vmatpush.bf16.msra.mxu0 %v2196_v50  ;;  %v2321_v49 = vld [vmem:[#allocation2 + $0x214] sm:$0xf0]  ;;  %v2283_v50 = vld [vmem:[#allocation2 + $0xec] sm:$0xf]  ;;  %v1716_v56 = vor.u32 %v2257_v43, %v1715_v42  ;;  %v2099_v59 = vld [vmem:[#allocation2 + $0x308] sm:$0xf] }
 0x1fe   :  { %1363 = vmatpush.bf16.msrb.mxu1 %v1796_v51  ;;  %v1829_v51 = vld [vmem:[#allocation2 + $0xf8] sm:$0xf0]  ;;  %v2353_v61 = vld [vmem:[#allocation2 + $0x314] sm:$0xf0]  ;;  %v1972_v0 = vor.u32 %v2321_v49, %v1971_v48  ;;  %v2335_v37 = vld [vmem:[#allocation2 + $0x28c] sm:$0xf] }
 0x1ff   :  { %1376 = vmatpush.bf16.msrb.mxu2 %v1924_v54  ;;  %v1957_v54 = vld [vmem:[#allocation2 + $0x1f8] sm:$0xf0]  ;;  %v1832_v5 = vor.u32 %v2283_v50, %v1829_v51  ;;  %v2100_v10 = vor.u32 %v2353_v61, %v2099_v59  ;;  %v2367_v39 = vld [vmem:[#allocation2 + $0x38c] sm:$0xf] }
 0x200   :  { %1389 = vmatpush.bf16.msrb.mxu3 %v2052_v55  ;;  %v2347_v55 = vld [vmem:[#allocation2 + $0x2ec] sm:$0xf]  ;;  %v1960_v6 = vor.u32 %v2315_v53, %v1957_v54  ;;  %v1909_v35 = vld [vmem:[#allocation2 + $0x198] sm:$0xf0] }
 0x201   :  { %1402 = vmatpush.bf16.msra.mxu0 %v2180_v1  ;;  %v2379_v1 = vld [vmem:[#allocation2 + $0x3ec] sm:$0xf]  ;;  %v1912_v42 = vor.u32 %v2303_v34, %v1909_v35  ;;  %v1893_v47 = vld [vmem:[#allocation2 + $0x178] sm:$0xf0] }
 0x202   :  { %1364 = vmatpush.bf16.msrb.mxu1 %v1780_v4  ;;  %v2213_v4 = vld [vmem:[#allocation2 + $0x3f8] sm:$0xf0]  ;;  %v2267_v43 = vld [vmem:[#allocation2 + $0x6c] sm:$0xf] }
 0x203   :  { %1377 = vmatpush.bf16.msrb.mxu2 %v1908_v7  ;;  %v2279_v7 = vld [vmem:[#allocation2 + $0xcc] sm:$0xf]  ;;  %v2216_v57 = vor.u32 %v2379_v1, %v2213_v4  ;;  %v2021_v50 = vld [vmem:[#allocation2 + $0x278] sm:$0xf0] }
 0x204   :  { %1390 = vmatpush.bf16.msrb.mxu3 %v2036_v9  ;;  %v2088_v9 = vor.u32 %v2347_v55, %v2085_v58  ;;  %v1816_v20 = vor.u32 %v2279_v7, %v1813_v11  ;;  %v2299_v46 = vld [vmem:[#allocation2 + $0x16c] sm:$0xf]  ;;  %v1749_v58 = vld [vmem:[#allocation2 + $0x58] sm:$0xf0] }
 0x205   :  { %1403 = vmatpush.bf16.msra.mxu0 %v2164_v17  ;;  %v2069_v17 = vld [vmem:[#allocation2 + $0x2d8] sm:$0xf0]  ;;  %v2331_v49 = vld [vmem:[#allocation2 + $0x26c] sm:$0xf]  ;;  %v1896_v54 = vor.u32 %v2299_v46, %v1893_v47 }
 0x206   :  { %1365 = vmatpush.bf16.msrb.mxu1 %v1764_v18  ;;  %v2375_v18 = vld [vmem:[#allocation2 + $0x3cc] sm:$0xf]  ;;  %v2072_v60 = vor.u32 %v2343_v16, %v2069_v17  ;;  %v1877_v61 = vld [vmem:[#allocation2 + $0x158] sm:$0xf0] }
 0x207   :  { %1378 = vmatpush.bf16.msrb.mxu2 %v1892_v21  ;;  %v1944_v21 = vor.u32 %v2311_v13, %v1941_v15  ;;  %v2200_v14 = vor.u32 %v2375_v18, %v2197_v19  ;;  %v2363_v51 = vld [vmem:[#allocation2 + $0x36c] sm:$0xf]  ;;  %v2005_v1 = vld [vmem:[#allocation2 + $0x258] sm:$0xf0] }
 0x208   :  { %1391 = vmatpush.bf16.msrb.mxu3 %v2020_v22  ;;  %v2275_v22 = vld [vmem:[#allocation2 + $0xac] sm:$0xf]  ;;  %v1733_v11 = vld [vmem:[#allocation2 + $0x38] sm:$0xf0] }
 0x209   :  { %1404 = vmatpush.bf16.msra.mxu0 %v2148_v26  ;;  %v2053_v26 = vld [vmem:[#allocation2 + $0x2b8] sm:$0xf0]  ;;  %v1800_v29 = vor.u32 %v2275_v22, %v1797_v12  ;;  %v2263_v55 = vld [vmem:[#allocation2 + $0x4c] sm:$0xf] }
 0x20a   :  { %1366 = vmatpush.bf16.msrb.mxu1 %v1748_v27  ;;  %v2371_v27 = vld [vmem:[#allocation2 + $0x3ac] sm:$0xf]  ;;  %v2056_v32 = vor.u32 %v2339_v25, %v2053_v26  ;;  %v1861_v15 = vld [vmem:[#allocation2 + $0x138] sm:$0xf0] }
 0x20b   :  { %1379 = vmatpush.bf16.msrb.mxu2 %v1876_v30  ;;  %v1928_v30 = vor.u32 %v2307_v23, %v1925_v24  ;;  %v2184_v36 = vor.u32 %v2371_v27, %v2181_v28  ;;  %v2295_v59 = vld [vmem:[#allocation2 + $0x14c] sm:$0xf]  ;;  %v1989_v17 = vld [vmem:[#allocation2 + $0x238] sm:$0xf0] }
 0x20c   :  { %1392 = vmatpush.bf16.msrb.mxu3 %v2004_v31  ;;  %v2271_v31 = vld [vmem:[#allocation2 + $0x8c] sm:$0xf]  ;;  %v1880_v7 = vor.u32 %v2295_v59, %v1877_v61  ;;  %v2117_v19 = vld [vmem:[#allocation2 + $0x338] sm:$0xf0] }
 0x20d   :  { %1405 = vmatpush.bf16.msra.mxu0 %v2132_v38  ;;  %v2037_v38 = vld [vmem:[#allocation2 + $0x298] sm:$0xf0]  ;;  %v1784_v41 = vor.u32 %v2271_v31, %v1781_v33  ;;  %v2359_v4 = vld [vmem:[#allocation2 + $0x34c] sm:$0xf]  ;;  %v2663_v33 = vld [vmem:[%s2679_s7] sm:$0xf] }
 0x20e   :  { %1367 = vmatpush.bf16.msrb.mxu1 %v1732_v40  ;;  %v2165_v40 = vld [vmem:[#allocation2 + $0x398] sm:$0xf0]  ;;  %v2291_v13 = vld [vmem:[#allocation2 + $0x12c] sm:$0xf]  ;;  %v609_v34 = vperm.slane %v2663_v33, 0  ;;  %v610_v47 = vperm.slane %v2663_v33, 1 }
 0x20f   :  { %1380 = vmatpush.bf16.msrb.mxu2 %v1860_v44  ;;  %v2040_v44 = vor.u32 %v2335_v37, %v2037_v38  ;;  %v2168_v48 = vor.u32 %v2367_v39, %v2165_v40  ;;  %v2323_v16 = vld [vmem:[#allocation2 + $0x22c] sm:$0xf]  ;;  %v1717_v12 = vld [vmem:[#allocation2 + $0x18] sm:$0xf0]  ;;  %s2537_s7 = smov [#allocation9]  }
 0x210   :  { %1393 = vmatpush.bf16.msrb.mxu3 %v1988_v45  ;;  %v1765_v45 = vld [vmem:[#allocation2 + $0x78] sm:$0xf0]  ;;  %v2355_v18 = vld [vmem:[#allocation2 + $0x32c] sm:$0xf]  ;;  %s1554_s27 = sshll.u32 %s2537_s7, 4  ;;  %s1555_s27 = int_to_ptr.vmem [resolvable:$true] %s1554_s27 }
 0x211   :  { %1406 = vmatpush.bf16.msra.mxu0 %v2116_v52  ;;  %v2149_v52 = vld [vmem:[#allocation2 + $0x378] sm:$0xf0]  ;;  %v1768_v53 = vor.u32 %v2267_v43, %v1765_v45  ;;  %v2255_v22 = vld [vmem:[#allocation2 + $0xc] sm:$0xf] }
 0x212   :  { %1368 = vmatpush.bf16.msrb.mxu1 %v1716_v56  ;;  %v2024_v56 = vor.u32 %v2331_v49, %v2021_v50  ;;  %v2287_v23 = vld [vmem:[#allocation2 + $0x10c] sm:$0xf]  ;;  %v1845_v24 = vld [vmem:[#allocation2 + $0x118] sm:$0xf0] }
 0x213   :  { %1381 = vmatpush.bf16.msrb.mxu2 %v1844_v63  ;;  %v2152_v63 = vor.u32 %v2363_v51, %v2149_v52  ;;  %v2319_v25 = vld [vmem:[#allocation2 + $0x20c] sm:$0xf]  ;;  %v1973_v26 = vld [vmem:[#allocation2 + $0x218] sm:$0xf0] }
 0x214   :  { %1394 = vmatpush.bf16.msrb.mxu3 %v1972_v0  ;;  %v2327_v0 = vld [vmem:[#allocation2 + $0x24c] sm:$0xf]  ;;  %v2101_v28 = vld [vmem:[#allocation2 + $0x318] sm:$0xf0]  ;;  %v1976_v31 = vor.u32 %v2319_v25, %v1973_v26 }
 0x215   :  { %1407 = vmatpush.bf16.msra.mxu0 %v2100_v10  ;;  %1369 = vmatmul.bf16.vlgmr.msrb.gmra.mxu1 %v2638_v3  ;;  %v2008_v10 = vor.u32 %v2327_v0, %v2005_v1  ;;  %v2351_v27 = vld [vmem:[#allocation2 + $0x30c] sm:$0xf] }
 0x216   :  { %1413 = vmatpush.bf16.msra.mxu1 %v1832_v5  ;;  %1382 = vmatmul.bf16.vlgmr.msrb.gmra.mxu2 %v2630_v62  ;;  %v2133_v5 = vld [vmem:[#allocation2 + $0x358] sm:$0xf0] }
 0x217   :  { %1426 = vmatpush.bf16.msra.mxu2 %v1960_v6  ;;  %1395 = vmatmul.bf16.vlgmr.msrb.gmra.mxu3 %v2634_v2  ;;  %v1752_v6 = vor.u32 %v2263_v55, %v1749_v58 }
 0x218   :  { %1439 = vmatpush.bf16.msra.mxu3 %v2088_v9  ;;  %1408 = vmatmul.bf16.vlgmr.msra.gmra.mxu0 %v2642_v8  ;;  %v2259_v9 = vld [vmem:[#allocation2 + $0x2c] sm:$0xf] }
 0x219   :  { %1452 = vmatpush.bf16.msrb.mxu0 %v2216_v57  ;;  %v2136_v57 = vor.u32 %v2359_v4, %v2133_v5 }
 0x21a   :  { %1414 = vmatpush.bf16.msra.mxu1 %v1816_v20  ;;  %v1736_v20 = vor.u32 %v2259_v9, %v1733_v11 }
 0x21b   :  { %1427 = vmatpush.bf16.msra.mxu2 %v1944_v21  ;;  %v1864_v21 = vor.u32 %v2291_v13, %v1861_v15 }
 0x21c   :  { %1440 = vmatpush.bf16.msra.mxu3 %v2072_v60  ;;  %v1992_v60 = vor.u32 %v2323_v16, %v1989_v17  ;;  %v611_v16 = vperm.slane %v2663_v33, 2 }
 0x21d   :  { %1453 = vmatpush.bf16.msrb.mxu0 %v2200_v14  ;;  %v2120_v14 = vor.u32 %v2355_v18, %v2117_v19 }
 0x21e   :  { %1415 = vmatpush.bf16.msra.mxu1 %v1800_v29  ;;  %v1720_v29 = vor.u32 %v2255_v22, %v1717_v12 }
 0x21f   :  { %1428 = vmatpush.bf16.msra.mxu2 %v1928_v30  ;;  %v1848_v30 = vor.u32 %v2287_v23, %v1845_v24 }
 0x220   :  { %1441 = vmatpush.bf16.msra.mxu3 %v2056_v32  ;;  %v2104_v32 = vor.u32 %v2351_v27, %v2101_v28 }
 0x221   :  { %1454 = vmatpush.bf16.msrb.mxu0 %v2184_v36 }
 0x222   :  { %1416 = vmatpush.bf16.msra.mxu1 %v1784_v41 }
 0x223   :  { %1429 = vmatpush.bf16.msra.mxu2 %v1912_v42 }
 0x224   :  { %1442 = vmatpush.bf16.msra.mxu3 %v2040_v44 }
 0x225   :  { %1455 = vmatpush.bf16.msrb.mxu0 %v2168_v48 }
 0x226   :  { %1417 = vmatpush.bf16.msra.mxu1 %v1768_v53 }
 0x227   :  { %1430 = vmatpush.bf16.msra.mxu2 %v1896_v54 }
 0x228   :  { %1443 = vmatpush.bf16.msra.mxu3 %v2024_v56 }
 0x229   :  { %1456 = vmatpush.bf16.msrb.mxu0 %v2152_v63 }
 0x22a   :  { %1418 = vmatpush.bf16.msra.mxu1 %v1752_v6 }
 0x22b   :  { %1431 = vmatpush.bf16.msra.mxu2 %v1880_v7 }
 0x22c   :  { %1444 = vmatpush.bf16.msra.mxu3 %v2008_v10 }
 0x22d   :  { %1457 = vmatpush.bf16.msrb.mxu0 %v2136_v57 }
 0x22e   :  { %1419 = vmatpush.bf16.msra.mxu1 %v1736_v20 }
 0x22f   :  { %1432 = vmatpush.bf16.msra.mxu2 %v1864_v21 }
 0x230   :  { %1445 = vmatpush.bf16.msra.mxu3 %v1992_v60 }
 0x231   :  { %1458 = vmatpush.bf16.msrb.mxu0 %v2120_v14 }
 0x232   :  { %1420 = vmatpush.bf16.msra.mxu1 %v1720_v29 }
 0x233   :  { %1433 = vmatpush.bf16.msra.mxu2 %v1848_v30 }
 0x234   :  { %1446 = vmatpush.bf16.msra.mxu3 %v1976_v31 }
 0x235   :  { %1459 = vmatpush.bf16.msrb.mxu0 %v2104_v32  ;;  %1421 = vmatmul.bf16.vlgmr.msra.gmra.mxu1 %v2638_v3 }
 0x236   :  { %1434 = vmatmul.bf16.vlgmr.msra.gmra.mxu2 %v2630_v62 }
 0x237   :  { %1447 = vmatmul.bf16.vlgmr.msra.gmra.mxu3 %v2634_v2 }
 0x238   :  { %1460 = vmatmul.bf16.vlgmr.msrb.gmra.mxu0 %v2642_v8 }
 0x252   :  { %v1266_v35 = vpop.f32.mrf.mxu1 }
 0x253   :  { %v1267_v36 = vadd.f32 %v1266_v35, %v609_v34 }
 0x255   :  { %v1305_v37 = vpop.f32.mrf.mxu0 }
 0x259   :  { %v1279_v38 = vpop.f32.mrf.mxu2 }
 0x25a   :  { %v1280_v39 = vadd.f32 %v1279_v38, %v1267_v36  ;;  %v1292_v40 = vpop.f32.mrf.mxu3  ;;  %v1268_v41 = vpop.f32.mrf.mxu1 }
 0x25c   :  { %v1293_v3 = vadd.f32 %v1292_v40, %v1280_v39 }
 0x25d   :  { %v1307_v42 = vpop.f32.mrf.mxu0 }
 0x25e   :  { %v1306_v62 = vadd.f32 %v1305_v37, %v1293_v3  ;;  %v612_v3 = vperm.slane %v2663_v33, 3 }
 0x260   :  { %v2217_v2 = vmul.f32 -1.442695, %v1306_v62 }
 0x261   :  { %v1281_v43 = vpop.f32.mrf.mxu2 }
 0x262   :  { %2409 = vpow2.f32 %v2217_v2  ;;  %v1294_v8 = vpop.f32.mrf.mxu3 }
 0x268   :  { %v2410_v44 = vpop.eup %2409 }
 0x269   :  { %v1477_v45 = vadd.f32 1.0, %v2410_v44 }
 0x26b   :  { %2411 = vrcp.f32 %v1477_v45  ;;  %v1492_v49 = vand.u32 2147483648, %v1477_v45  ;;  %vm1486_vm2 = vweird.f32 %v1477_v45  ;;  %v1490_v51 = vand.u32 2147483647, %v1477_v45 }
 0x26d   :  { %v1493_v58 = vor.u32 1.1754944e-38, %v1492_v49  ;;  %vm1491_vm5 = vcmp.eq.f32.partialorder %v1490_v51, 8.507059e+37 }
 0x271   :  { %v2412_v46 = vpop.eup %2411 }
 0x272   :  { %v1482_v48 = vmul.f32 %v2412_v46, %v1477_v45  ;;  %vm1487_vm3 = vweird.f32 %v2412_v46  ;;  %v1318_v52 = vpop.f32.mrf.mxu1 }
 0x273   :  { %v1319_v54 = vadd.f32 %v1318_v52, %v610_v47  ;;  %vm1488_vm4 = vmor %vm1486_vm2, %vm1487_vm3 }
 0x274   :  { %v1483_v50 = vsub.f32 1.0, %v1482_v48 }
 0x275   :  { %v1357_v53 = vpop.f32.mrf.mxu0 }
 0x276   :  { %v1484_v55 = vmul.f32 %v2412_v46, %v1483_v50 }
 0x278   :  { %v1485_v63 = vadd.f32 %v2412_v46, %v1484_v55 }
 0x279   :  { %v1331_v56 = vpop.f32.mrf.mxu2 }
 0x27a   :  { %v1332_v59 = vadd.f32 %v1331_v56, %v1319_v54  ;;  %v1344_v61 = vpop.f32.mrf.mxu3  ;;  %v1489_v1 = vsel %vm1488_vm4, %v2412_v46, %v1485_v63  ;;  %v1320_v7 = vpop.f32.mrf.mxu1 }
 0x27b   :  { %v1494_v4 = vsel %vm1491_vm5, %v1493_v58, %v1489_v1 }
 0x27c   :  { %v1345_v0 = vadd.f32 %v1344_v61, %v1332_v59  ;;  %v1541_v6 = vmul.f32 %v1494_v4, %v1306_v62 }
 0x27d   :  { %v1359_v9 = vpop.f32.mrf.mxu0 }
 0x27e   :  { %v1358_v5 = vadd.f32 %v1357_v53, %v1345_v0  ;;  %1545 = vst [vmem:[#allocation9] sm:$0xff] %v1541_v6 }
 0x280   :  { %v2218_v10 = vmul.f32 -1.442695, %v1358_v5 }
 0x281   :  { %v1333_v11 = vpop.f32.mrf.mxu2 }
 0x282   :  { %2413 = vpow2.f32 %v2218_v10  ;;  %v1346_v13 = vpop.f32.mrf.mxu3 }
 0x288   :  { %v2414_v15 = vpop.eup %2413 }
 0x289   :  { %v1478_v57 = vadd.f32 1.0, %v2414_v15 }
 0x28b   :  { %2415 = vrcp.f32 %v1478_v57  ;;  %vm1501_vm6 = vweird.f32 %v1478_v57  ;;  %v1507_v20 = vand.u32 2147483648, %v1478_v57  ;;  %v1505_v22 = vand.u32 2147483647, %v1478_v57 }
 0x28d   :  { %v1508_v24 = vor.u32 1.1754944e-38, %v1507_v20  ;;  %vm1506_vm9 = vcmp.eq.f32.partialorder %v1505_v22, 8.507059e+37 }
 0x291   :  { %v2416_v17 = vpop.eup %2415 }
 0x292   :  { %v1497_v18 = vmul.f32 %v2416_v17, %v1478_v57  ;;  %v1370_v19 = vpop.f32.mrf.mxu1  ;;  %vm1502_vm7 = vweird.f32 %v2416_v17 }
 0x293   :  { %v1371_v60 = vadd.f32 %v1370_v19, %v611_v16  ;;  %vm1503_vm8 = vmor %vm1501_vm6, %vm1502_vm7 }
 0x294   :  { %v1498_v21 = vsub.f32 1.0, %v1497_v18 }
 0x295   :  { %v1409_v12 = vpop.f32.mrf.mxu0 }
 0x296   :  { %v1499_v23 = vmul.f32 %v2416_v17, %v1498_v21 }
 0x298   :  { %v1500_v25 = vadd.f32 %v2416_v17, %v1499_v23 }
 0x299   :  { %v1383_v14 = vpop.f32.mrf.mxu2 }
 0x29a   :  { %v1384_v26 = vadd.f32 %v1383_v14, %v1371_v60  ;;  %v1396_v27 = vpop.f32.mrf.mxu3  ;;  %v1504_v28 = vsel %vm1503_vm8, %v2416_v17, %v1500_v25  ;;  %v1372_v30 = vpop.f32.mrf.mxu1 }
 0x29b   :  { %v1509_v31 = vsel %vm1506_vm9, %v1508_v24, %v1504_v28 }
 0x29c   :  { %v1397_v29 = vadd.f32 %v1396_v27, %v1384_v26  ;;  %v1542_v32 = vmul.f32 %v1509_v31, %v1358_v5 }
 0x29d   :  { %v1411_v35 = vpop.f32.mrf.mxu0 }
 0x29e   :  { %v1410_v34 = vadd.f32 %v1409_v12, %v1397_v29  ;;  %1546 = vst [vmem:[#allocation9 + $0x8] sm:$0xff] %v1542_v32 }
 0x2a0   :  { %v2219_v36 = vmul.f32 -1.442695, %v1410_v34 }
 0x2a1   :  { %v1385_v37 = vpop.f32.mrf.mxu2 }
 0x2a2   :  { %2417 = vpow2.f32 %v2219_v36  ;;  %v1398_v38 = vpop.f32.mrf.mxu3 }
 0x2a8   :  { %v2418_v39 = vpop.eup %2417 }
 0x2a9   :  { %v1479_v40 = vadd.f32 1.0, %v2418_v39 }
 0x2ab   :  { %2419 = vrcp.f32 %v1479_v40  ;;  %v1522_v43 = vand.u32 2147483648, %v1479_v40  ;;  %vm1516_vm10 = vweird.f32 %v1479_v40  ;;  %v1520_v45 = vand.u32 2147483647, %v1479_v40 }
 0x2ad   :  { %v1523_v48 = vor.u32 1.1754944e-38, %v1522_v43  ;;  %vm1521_vm13 = vcmp.eq.f32.partialorder %v1520_v45, 8.507059e+37 }
 0x2b1   :  { %v2420_v62 = vpop.eup %2419 }
 0x2b2   :  { %v1422_v41 = vpop.f32.mrf.mxu1  ;;  %v1512_v42 = vmul.f32 %v2420_v62, %v1479_v40  ;;  %vm1517_vm11 = vweird.f32 %v2420_v62 }
 0x2b3   :  { %v1423_v8 = vadd.f32 %v1422_v41, %v612_v3  ;;  %vm1518_vm12 = vmor %vm1516_vm10, %vm1517_vm11 }
 0x2b4   :  { %v1513_v44 = vsub.f32 1.0, %v1512_v42 }
 0x2b5   :  { %v1461_v2 = vpop.f32.mrf.mxu0 }
 0x2b6   :  { %v1514_v46 = vmul.f32 %v2420_v62, %v1513_v44 }
 0x2b8   :  { %v1515_v51 = vadd.f32 %v2420_v62, %v1514_v46 }
 0x2b9   :  { %v1435_v47 = vpop.f32.mrf.mxu2 }
 0x2ba   :  { %v1436_v49 = vadd.f32 %v1435_v47, %v1423_v8  ;;  %v1448_v50 = vpop.f32.mrf.mxu3  ;;  %v1424_v52 = vpop.f32.mrf.mxu1  ;;  %v1519_v53 = vsel %vm1518_vm12, %v2420_v62, %v1515_v51 }
 0x2bb   :  { %v1524_v55 = vsel %vm1521_vm13, %v1523_v48, %v1519_v53 }
 0x2bc   :  { %v1449_v33 = vadd.f32 %v1448_v50, %v1436_v49  ;;  %v1543_v58 = vmul.f32 %v1524_v55, %v1410_v34 }
 0x2bd   :  { %v1463_v54 = vpop.f32.mrf.mxu0 }
 0x2be   :  { %v1462_v56 = vadd.f32 %v1461_v2, %v1449_v33  ;;  %1547 = vst [vmem:[#allocation9 + $0x10] sm:$0xff] %v1543_v58 }
 0x2c0   :  { %v2220_v59 = vmul.f32 -1.442695, %v1462_v56 }
 0x2c1   :  { %v1437_v61 = vpop.f32.mrf.mxu2 }
 0x2c2   :  { %2421 = vpow2.f32 %v2220_v59  ;;  %v1450_v63 = vpop.f32.mrf.mxu3 }
 0x2c8   :  { %v2422_v0 = vpop.eup %2421 }
 0x2c9   :  { %v1480_v1 = vadd.f32 1.0, %v2422_v0 }
 0x2cb   :  { %2423 = vrcp.f32 %v1480_v1  ;;  %v1537_v7 = vand.u32 2147483648, %v1480_v1  ;;  %v1535_v10 = vand.u32 2147483647, %v1480_v1  ;;  %vm1531_vm15 = vweird.f32 %v1480_v1 }
 0x2cd   :  { %v1538_v13 = vor.u32 1.1754944e-38, %v1537_v7  ;;  %vm1536_vm1 = vcmp.eq.f32.partialorder %v1535_v10, 8.507059e+37 }
 0x2d1   :  { %v2424_v4 = vpop.eup %2423 }
 0x2d2   :  { %v1527_v5 = vmul.f32 %v2424_v4, %v1480_v1  ;;  %vm1532_vm14 = vweird.f32 %v2424_v4 }
 0x2d3   :  { %vm1533_vm0 = vmor %vm1531_vm15, %vm1532_vm14 }
 0x2d4   :  { %v1528_v6 = vsub.f32 1.0, %v1527_v5 }
 0x2d6   :  { %v1529_v9 = vmul.f32 %v2424_v4, %v1528_v6 }
 0x2d8   :  { %v1530_v11 = vadd.f32 %v2424_v4, %v1529_v9 }
 0x2da   :  { %v1534_v15 = vsel %vm1533_vm0, %v2424_v4, %v1530_v11 }
 0x2db   :  { %v1539_v57 = vsel %vm1536_vm1, %v1538_v13, %v1534_v15 }
 0x2dc   :  { %v1544_v16 = vmul.f32 %v1539_v57, %v1462_v56 }
 0x2de   :  { %1548 = vst [vmem:[#allocation9 + $0x18] sm:$0xff] %v1544_v16 }
 0x2df   :  { %1559 = dma.vmem_to_hbm [thread:$0]  %s1555_s27, 512, %s1557_s30, [#allocation6]  }
 0x2e0   :  { %2527 = dma.done.wait [#allocation6], 512  }
 0x2e1   :  { %2528 = vsyncadd [#allocation6], 4294966784 }
 0x2e2   :  { %1564 = vsyncpa [#allocation5], 1 }
 0x2e3   :  { %1565 = vsyncpa [#allocation8], 1 }
 0x2e4   :  { %1566 = vsyncpa [#allocation6], 1 }
 0x2e5   :  { %1567 = vsyncmov [#allocation3] }
 0x2e8   :  { %s1568_s9 = vpop.sfrf %1567 }
 0x2e9   :  { %p2221_p0 = scmp.ne.s32.totalorder %s1568_s9, 0 }
 0x2eb   :  { %1572 = shalt.err (%p2221_p0)  }

</bundles_post_ra>
